<compile_context>
chip_gen: v7x
topology: tpu7x:2x2x1
jax: 0.10.0
libtpu: 0.0.40
codegen_flags: <defaults>
</compile_context>

<pallas_src>
import functools

import jax
import jax.numpy as jnp
import numpy as np
from jax.experimental import pallas as pl
from jax.experimental.pallas import tpu as pltpu

IN_FEAT = 4
EMB = 16
HID = 64
DEC1 = 60
DEC2 = 30
OUT_FEAT = 6
OUT_PAD = 128           # lane-dense output width
NEG_SLOPE = 0.01        # nn.LeakyReLU default


# ---------------------------------------------------------------------------
# Kernel: one invocation processes the entire (padded) sequence.
#   x_ref      : (T*B_pad, 4)     time-major, batch padded to 8
#   out_ref    : (T*B_pad, 128)   lane-dense, cols [6:] are zero-padding
#   gin_ref    : (T*B_pad, 256)   scratch: precomputed  x @ W_in0 + b_in0
#   h1buf_ref  : (T*B_pad, 64)    scratch: layer-1 hidden states for all t
# ---------------------------------------------------------------------------
def _dron_kernel(
    x_ref,
    w_in0_ref, b_in0_ref,                    # (4,256), (1,256)  fused input->gate0
    whh0_ref,                                # (64,256)
    w1_ref, b1_ref,                          # (128,256) = [wih1; whh1], (1,256)
    wd1_ref, bd1_ref,                        # (64,60), (1,60)
    wd2_ref, bd2_ref,                        # (60,30), (1,30)
    wd3_ref, bd3_ref,                        # (30,128), (1,128)  lane-padded
    out_ref,
    gin_ref, h1buf_ref,
    *, seq_len, b_pad,
):
    f32 = jnp.float32

    # ---- hoisted, batched (over T*B rows) non-recurrent work -----------------
    # fused input Linear + layer-0 input-gate GEMM for every (t, b) at once
    gin_ref[...] = (
        jnp.dot(x_ref[...], w_in0_ref[...], preferred_element_type=f32)
        + b_in0_ref[...]
    )

    # recurrent weights loaded once, stay resident
    whh0 = whh0_ref[...]
    w1 = w1_ref[...]
    # hoist the bias broadcast out of the (unrolled) loop body
    b1_bcast = jnp.broadcast_to(b1_ref[...], (b_pad, 4 * HID))

    def gates_to_state(gates, c):
        # PyTorch gate order: i, f, g, o.
        # i and f share one full-lane (.,128) EUP pass; sigmoid via tanh:
        #   sigmoid(x) = 0.5 * tanh(0.5 * x) + 0.5
        if_act = 0.5 * jnp.tanh(0.5 * gates[:, : 2 * HID]) + 0.5
        i = if_act[:, :HID]
        f = if_act[:, HID:]
        g = jnp.tanh(gates[:, 2 * HID : 3 * HID])
        o = 0.5 * jnp.tanh(0.5 * gates[:, 3 * HID : 4 * HID]) + 0.5
        c_new = f * c + i * g
        h_new = o * jnp.tanh(c_new)
        return h_new, c_new

    # ---- serial recurrence: only the LSTM cells stay on the critical path ----
    def step(t, carry):
        h0, c0, h1, c1 = carry
        row = pl.multiple_of(t * b_pad, b_pad)   # sublane-aligned (b_pad == 8)

        # layer 0: input contribution precomputed; only h0 @ W_hh0 is sequential
        g0 = gin_ref[pl.ds(row, b_pad), :] + jnp.dot(
            h0, whh0, preferred_element_type=f32)
        h0, c0 = gates_to_state(g0, c0)

        # layer 1: single stacked matmul  [h0 | h1] @ [wih1; whh1]
        h01 = jnp.concatenate([h0, h1], axis=-1)            # (b_pad, 128)
        g1 = jnp.dot(h01, w1, preferred_element_type=f32) + b1_bcast
        h1, c1 = gates_to_state(g1, c1)

        # buffer layer-1 output; decoder runs batched after the loop
        h1buf_ref[pl.ds(row, b_pad), :] = h1
        return h0, c0, h1, c1

    zeros = jnp.zeros((b_pad, HID), f32)
    unroll = seq_len if seq_len <= 16 else 8
    jax.lax.fori_loop(0, seq_len, step, (zeros, zeros, zeros, zeros),
                      unroll=unroll)

    # ---- decoder MLP, batched over all T*B rows -------------------------------
    def leaky(v):
        return jnp.where(v > 0, v, NEG_SLOPE * v)

    h_all = h1buf_ref[...]
    d = leaky(jnp.dot(h_all, wd1_ref[...], preferred_element_type=f32) + bd1_ref[...])
    d = leaky(jnp.dot(d, wd2_ref[...], preferred_element_type=f32) + bd2_ref[...])
    # lane-dense (128-wide) store; padded cols are exactly zero (zero weights)
    out_ref[...] = jnp.dot(d, wd3_ref[...], preferred_element_type=f32) + bd3_ref[...]


# ---------------------------------------------------------------------------
# Wrapper
# ---------------------------------------------------------------------------
def dron_agent_forward(x, params):
    """x: (B, T, 4) float32 -> (B, T, 6) float32."""
    B, T, f_in = x.shape
    assert f_in == IN_FEAT

    # pad batch to a sublane multiple so all in-kernel row slices are aligned
    b_pad = max(8, ((B + 7) // 8) * 8)
    x_tbf = jnp.transpose(x, (1, 0, 2))                       # (T, B, 4) time-major
    x_tbf = jnp.pad(x_tbf, ((0, 0), (0, b_pad - B), (0, 0)))  # (T, b_pad, 4)
    x2d = x_tbf.reshape(T * b_pad, IN_FEAT)                   # (T*b_pad, 4)

    # ---- wrapper-time algebraic fusions / layout prep ------------------------
    # fuse input Linear into layer-0 input-gate GEMM
    w_in0 = params["win"] @ params["wih0"]                    # (4, 256)
    b_in0 = params["bin"] @ params["wih0"] + params["b0"]     # (1, 256)
    # stack layer-1 input/recurrent weights
    w1 = jnp.concatenate([params["wih1"], params["whh1"]], axis=0)  # (128, 256)
    # lane-dense output head (zero-padded columns)
    wd3_p = jnp.pad(params["wd3"], ((0, 0), (0, OUT_PAD - OUT_FEAT)))  # (30, 128)
    bd3_p = jnp.pad(params["bd3"], ((0, 0), (0, OUT_PAD - OUT_FEAT)))  # (1, 128)

    flat = [
        w_in0, b_in0,
        params["whh0"],
        w1, params["b1"],
        params["wd1"], params["bd1"],
        params["wd2"], params["bd2"],
        wd3_p, bd3_p,
    ]

    # keep scoped VMEM in check as T grows (scratch + x + out scale with T)
    row_bytes = 4 * (128 + 4 * HID + 128 + OUT_PAD)   # x, gin, h1buf, out (lane-padded)
    est = 2 * T * b_pad * row_bytes + (2 << 20)       # 2x headroom + weights
    vmem_limit = int(min(max(est, 32 << 20), 64 << 20))

    vmem = pltpu.MemorySpace.VMEM
    kernel = functools.partial(_dron_kernel, seq_len=T, b_pad=b_pad)

    y2d = pl.pallas_call(
        kernel,
        out_shape=jax.ShapeDtypeStruct((T * b_pad, OUT_PAD), jnp.float32),
        in_specs=[pl.BlockSpec(memory_space=vmem)] * (1 + len(flat)),
        out_specs=pl.BlockSpec(memory_space=vmem),
        scratch_shapes=[
            pltpu.VMEM((T * b_pad, 4 * HID), jnp.float32),    # hoisted layer-0 gates
            pltpu.VMEM((T * b_pad, HID), jnp.float32),        # layer-1 hidden buffer
        ],
        compiler_params=pltpu.CompilerParams(vmem_limit_bytes=vmem_limit),
    )(x2d, *flat)

    y = y2d.reshape(T, b_pad, OUT_PAD)[:, :B, :OUT_FEAT]      # drop pad rows / lanes
    return jnp.transpose(y, (1, 0, 2))                        # (B, T, 6)


# ---------------------------------------------------------------------------
# Deterministic parameter init (PyTorch-style uniform(-1/sqrt(fan_in), +)).
# Weights stored pre-transposed as (in, out); biases as (1, out).
# ---------------------------------------------------------------------------
def init_params(key):
    def uniform(key, shape, fan_in):
        bound = 1.0 / np.sqrt(fan_in)
        return jax.random.uniform(key, shape, jnp.float32, -bound, bound)

    keys = jax.random.split(key, 20)
    p = {}
    # input Linear(4, 16)
    p["win"] = uniform(keys[0], (IN_FEAT, EMB), IN_FEAT)
    p["bin"] = uniform(keys[1], (1, EMB), IN_FEAT)
    # LSTM layer 0: weight_ih (4H, 16), weight_hh (4H, 64) -> stored transposed
    p["wih0"] = uniform(keys[2], (EMB, 4 * HID), HID)
    p["whh0"] = uniform(keys[3], (HID, 4 * HID), HID)
    b_ih0 = uniform(keys[4], (1, 4 * HID), HID)
    b_hh0 = uniform(keys[5], (1, 4 * HID), HID)
    p["b0"] = b_ih0 + b_hh0
    # LSTM layer 1
    p["wih1"] = uniform(keys[6], (HID, 4 * HID), HID)
    p["whh1"] = uniform(keys[7], (HID, 4 * HID), HID)
    b_ih1 = uniform(keys[8], (1, 4 * HID), HID)
    b_hh1 = uniform(keys[9], (1, 4 * HID), HID)
    p["b1"] = b_ih1 + b_hh1
    # decoder
    p["wd1"] = uniform(keys[10], (HID, DEC1), HID)
    p["bd1"] = uniform(keys[11], (1, DEC1), HID)
    p["wd2"] = uniform(keys[12], (DEC1, DEC2), DEC1)
    p["bd2"] = uniform(keys[13], (1, DEC2), DEC1)
    p["wd3"] = uniform(keys[14], (DEC2, OUT_FEAT), DEC2)
    p["bd3"] = uniform(keys[15], (1, OUT_FEAT), DEC2)
    return p


# ---------------------------------------------------------------------------
# Pure-JAX reference (same math, for a sanity check)
# ---------------------------------------------------------------------------
def reference_forward(x, p):
    B, T, _ = x.shape
    z = x @ p["win"] + p["bin"]  # (B, T, 16)

    def run_layer(inp, wih, whh, b):
        def step(carry, xt):
            h, c = carry
            gates = xt @ wih + h @ whh + b
            i = jax.nn.sigmoid(gates[:, 0 * HID : 1 * HID])
            f = jax.nn.sigmoid(gates[:, 1 * HID : 2 * HID])
            g = jnp.tanh(gates[:, 2 * HID : 3 * HID])
            o = jax.nn.sigmoid(gates[:, 3 * HID : 4 * HID])
            c = f * c + i * g
            h = o * jnp.tanh(c)
            return (h, c), h

        init = (jnp.zeros((B, HID), jnp.float32), jnp.zeros((B, HID), jnp.float32))
        _, hs = jax.lax.scan(step, init, jnp.transpose(inp, (1, 0, 2)))
        return jnp.transpose(hs, (1, 0, 2))

    h = run_layer(z, p["wih0"], p["whh0"], p["b0"])
    h = run_layer(h, p["wih1"], p["whh1"], p["b1"])
    leaky = lambda v: jnp.where(v > 0, v, NEG_SLOPE * v)
    d = leaky(h @ p["wd1"] + p["bd1"])
    d = leaky(d @ p["wd2"] + p["bd2"])
    return d @ p["wd3"] + p["bd3"]


if __name__ == "__main__":
    key = jax.random.PRNGKey(0)
    k_x, k_p = jax.random.split(key)

    B, T = 2, 8
    x = jax.random.normal(k_x, (B, T, IN_FEAT), jnp.float32)
    params = init_params(k_p)

    y = jax.block_until_ready(dron_agent_forward(x, params))
    y_ref = jax.block_until_ready(reference_forward(x, params))

    assert y.shape == (B, T, OUT_FEAT), y.shape
    np.testing.assert_allclose(np.asarray(y), np.asarray(y_ref), rtol=1e-2, atol=1e-2)

    print("KERNEL_OK")
</pallas_src>

<mosaic_0001>
module attributes {stable_mosaic.version = 11 : i64} {
  func.func @_dron_kernel(%arg0: memref<64x4xf32, #tpu.memory_space<vmem>>, %arg1: memref<4x256xf32, #tpu.memory_space<vmem>>, %arg2: memref<1x256xf32, #tpu.memory_space<vmem>>, %arg3: memref<64x256xf32, #tpu.memory_space<vmem>>, %arg4: memref<128x256xf32, #tpu.memory_space<vmem>>, %arg5: memref<1x256xf32, #tpu.memory_space<vmem>>, %arg6: memref<64x60xf32, #tpu.memory_space<vmem>>, %arg7: memref<1x60xf32, #tpu.memory_space<vmem>>, %arg8: memref<60x30xf32, #tpu.memory_space<vmem>>, %arg9: memref<1x30xf32, #tpu.memory_space<vmem>>, %arg10: memref<30x128xf32, #tpu.memory_space<vmem>>, %arg11: memref<1x128xf32, #tpu.memory_space<vmem>>, %arg12: memref<64x128xf32, #tpu.memory_space<vmem>>, %arg13: memref<64x256xf32, #tpu.memory_space<vmem>>, %arg14: memref<64x64xf32, #tpu.memory_space<vmem>>) attributes {dimension_semantics = [], scalar_prefetch = 0 : i64, scratch_operands = 2 : i64, tpu.core_type = #tpu.core_type<tc>} {
    %c0 = arith.constant 0 : index
    %c0_0 = arith.constant 0 : index
    %0 = vector.load %arg0[%c0, %c0_0] : memref<64x4xf32, #tpu.memory_space<vmem>>, vector<64x4xf32>
    %c0_1 = arith.constant 0 : index
    %c0_2 = arith.constant 0 : index
    %1 = vector.load %arg1[%c0_1, %c0_2] : memref<4x256xf32, #tpu.memory_space<vmem>>, vector<4x256xf32>
    %cst = arith.constant dense<0.000000e+00> : vector<64x256xf32>
    %2 = tpu.matmul %0, %1, %cst {dimension_numbers = #tpu.dot_dimension_numbers<[1], [0], [0], [1], [0, 0, 1, 1], [], []>} : vector<64x4xf32>, vector<4x256xf32>, vector<64x256xf32> -> vector<64x256xf32>
    %c0_3 = arith.constant 0 : index
    %c0_4 = arith.constant 0 : index
    %3 = vector.load %arg2[%c0_3, %c0_4] : memref<1x256xf32, #tpu.memory_space<vmem>>, vector<1x256xf32>
    %4 = vector.broadcast %3 : vector<1x256xf32> to vector<64x256xf32>
    %5 = arith.addf %2, %4 : vector<64x256xf32>
    %c0_5 = arith.constant 0 : index
    %c0_6 = arith.constant 0 : index
    %6 = vector.load %arg13[%c0_5, %c0_6] : memref<64x256xf32, #tpu.memory_space<vmem>>, vector<64x256xf32>
    tpu.vector_store %arg13[%c0_5, %c0_6], %5 {strides = array<i32>} : memref<64x256xf32, #tpu.memory_space<vmem>>, vector<64x256xf32>,
    %c0_7 = arith.constant 0 : index
    %c0_8 = arith.constant 0 : index
    %7 = vector.load %arg3[%c0_7, %c0_8] : memref<64x256xf32, #tpu.memory_space<vmem>>, vector<64x256xf32>
    %c0_9 = arith.constant 0 : index
    %c0_10 = arith.constant 0 : index
    %8 = vector.load %arg4[%c0_9, %c0_10] : memref<128x256xf32, #tpu.memory_space<vmem>>, vector<128x256xf32>
    %c0_11 = arith.constant 0 : index
    %c0_12 = arith.constant 0 : index
    %9 = vector.load %arg5[%c0_11, %c0_12] : memref<1x256xf32, #tpu.memory_space<vmem>>, vector<1x256xf32>
    %10 = vector.shape_cast %9 : vector<1x256xf32> to vector<1x256xf32>
    %11 = vector.broadcast %10 : vector<1x256xf32> to vector<8x256xf32>
    %cst_13 = arith.constant 0.000000e+00 : f32
    %12 = vector.broadcast %cst_13 : f32 to vector<8x64xf32>
    %c0_i32 = arith.constant 0 : i32
    %c8_i32 = arith.constant 8 : i32
    %13 = arith.muli %c0_i32, %c8_i32 : i32
    %14 = tpu.assume_multiple %13, 8 : i32
    %15 = arith.index_cast %14 : i32 to index
    %c0_14 = arith.constant 0 : index
    %16 = vector.load %arg13[%15, %c0_14] : memref<64x256xf32, #tpu.memory_space<vmem>>, vector<8x256xf32>
    %cst_15 = arith.constant dense<0.000000e+00> : vector<8x256xf32>
    %17 = tpu.matmul %12, %7, %cst_15 {dimension_numbers = #tpu.dot_dimension_numbers<[1], [0], [0], [1], [0, 0, 1, 1], [], []>} : vector<8x64xf32>, vector<64x256xf32>, vector<8x256xf32> -> vector<8x256xf32>
    %18 = arith.addf %16, %17 : vector<8x256xf32>
    %19 = vector.extract_strided_slice %18 {offsets = [0, 0], sizes = [8, 128], strides = [1, 1]} : vector<8x256xf32> to vector<8x128xf32>
    %cst_16 = arith.constant 5.000000e-01 : f32
    %20 = vector.broadcast %cst_16 : f32 to vector<8x128xf32>
    %21 = arith.mulf %20, %19 : vector<8x128xf32>
    %22 = math.tanh %21 : vector<8x128xf32>
    %cst_17 = arith.constant 5.000000e-01 : f32
    %23 = vector.broadcast %cst_17 : f32 to vector<8x128xf32>
    %24 = arith.mulf %23, %22 : vector<8x128xf32>
    %cst_18 = arith.constant 5.000000e-01 : f32
    %25 = vector.broadcast %cst_18 : f32 to vector<8x128xf32>
    %26 = arith.addf %24, %25 : vector<8x128xf32>
    %27 = vector.extract_strided_slice %26 {offsets = [0, 0], sizes = [8, 64], strides = [1, 1]} : vector<8x128xf32> to vector<8x64xf32>
    %28 = vector.extract_strided_slice %26 {offsets = [0, 64], sizes = [8, 64], strides = [1, 1]} : vector<8x128xf32> to vector<8x64xf32>
    %29 = vector.extract_strided_slice %18 {offsets = [0, 128], sizes = [8, 64], strides = [1, 1]} : vector<8x256xf32> to vector<8x64xf32>
    %30 = math.tanh %29 : vector<8x64xf32>
    %31 = vector.extract_strided_slice %18 {offsets = [0, 192], sizes = [8, 64], strides = [1, 1]} : vector<8x256xf32> to vector<8x64xf32>
    %cst_19 = arith.constant 5.000000e-01 : f32
    %32 = vector.broadcast %cst_19 : f32 to vector<8x64xf32>
    %33 = arith.mulf %32, %31 : vector<8x64xf32>
    %34 = math.tanh %33 : vector<8x64xf32>
    %cst_20 = arith.constant 5.000000e-01 : f32
    %35 = vector.broadcast %cst_20 : f32 to vector<8x64xf32>
    %36 = arith.mulf %35, %34 : vector<8x64xf32>
    %cst_21 = arith.constant 5.000000e-01 : f32
    %37 = vector.broadcast %cst_21 : f32 to vector<8x64xf32>
    %38 = arith.addf %36, %37 : vector<8x64xf32>
    %39 = arith.mulf %28, %12 : vector<8x64xf32>
    %40 = arith.mulf %27, %30 : vector<8x64xf32>
    %41 = arith.addf %39, %40 : vector<8x64xf32>
    %42 = math.tanh %41 : vector<8x64xf32>
    %43 = arith.mulf %38, %42 : vector<8x64xf32>
    %44 = tpu.concatenate %43, %12 in 1 : vector<8x64xf32>, vector<8x64xf32> -> vector<8x128xf32>
    %cst_22 = arith.constant dense<0.000000e+00> : vector<8x256xf32>
    %45 = tpu.matmul %44, %8, %cst_22 {dimension_numbers = #tpu.dot_dimension_numbers<[1], [0], [0], [1], [0, 0, 1, 1], [], []>} : vector<8x128xf32>, vector<128x256xf32>, vector<8x256xf32> -> vector<8x256xf32>
    %46 = arith.addf %45, %11 : vector<8x256xf32>
    %47 = vector.extract_strided_slice %46 {offsets = [0, 0], sizes = [8, 128], strides = [1, 1]} : vector<8x256xf32> to vector<8x128xf32>
    %cst_23 = arith.constant 5.000000e-01 : f32
    %48 = vector.broadcast %cst_23 : f32 to vector<8x128xf32>
    %49 = arith.mulf %48, %47 : vector<8x128xf32>
    %50 = math.tanh %49 : vector<8x128xf32>
    %cst_24 = arith.constant 5.000000e-01 : f32
    %51 = vector.broadcast %cst_24 : f32 to vector<8x128xf32>
    %52 = arith.mulf %51, %50 : vector<8x128xf32>
    %cst_25 = arith.constant 5.000000e-01 : f32
    %53 = vector.broadcast %cst_25 : f32 to vector<8x128xf32>
    %54 = arith.addf %52, %53 : vector<8x128xf32>
    %55 = vector.extract_strided_slice %54 {offsets = [0, 0], sizes = [8, 64], strides = [1, 1]} : vector<8x128xf32> to vector<8x64xf32>
    %56 = vector.extract_strided_slice %54 {offsets = [0, 64], sizes = [8, 64], strides = [1, 1]} : vector<8x128xf32> to vector<8x64xf32>
    %57 = vector.extract_strided_slice %46 {offsets = [0, 128], sizes = [8, 64], strides = [1, 1]} : vector<8x256xf32> to vector<8x64xf32>
    %58 = math.tanh %57 : vector<8x64xf32>
    %59 = vector.extract_strided_slice %46 {offsets = [0, 192], sizes = [8, 64], strides = [1, 1]} : vector<8x256xf32> to vector<8x64xf32>
    %cst_26 = arith.constant 5.000000e-01 : f32
    %60 = vector.broadcast %cst_26 : f32 to vector<8x64xf32>
    %61 = arith.mulf %60, %59 : vector<8x64xf32>
    %62 = math.tanh %61 : vector<8x64xf32>
    %cst_27 = arith.constant 5.000000e-01 : f32
    %63 = vector.broadcast %cst_27 : f32 to vector<8x64xf32>
    %64 = arith.mulf %63, %62 : vector<8x64xf32>
    %cst_28 = arith.constant 5.000000e-01 : f32
    %65 = vector.broadcast %cst_28 : f32 to vector<8x64xf32>
    %66 = arith.addf %64, %65 : vector<8x64xf32>
    %67 = arith.mulf %56, %12 : vector<8x64xf32>
    %68 = arith.mulf %55, %58 : vector<8x64xf32>
    %69 = arith.addf %67, %68 : vector<8x64xf32>
    %70 = math.tanh %69 : vector<8x64xf32>
    %71 = arith.mulf %66, %70 : vector<8x64xf32>
    %72 = arith.index_cast %14 : i32 to index
    %c0_29 = arith.constant 0 : index
    %73 = vector.load %arg14[%72, %c0_29] : memref<64x64xf32, #tpu.memory_space<vmem>>, vector<8x64xf32>
    tpu.vector_store %arg14[%72, %c0_29], %71 {strides = array<i32>} : memref<64x64xf32, #tpu.memory_space<vmem>>, vector<8x64xf32>,
    %c1_i32 = arith.constant 1 : i32
    %c8_i32_30 = arith.constant 8 : i32
    %74 = arith.muli %c1_i32, %c8_i32_30 : i32
    %75 = tpu.assume_multiple %74, 8 : i32
    %76 = arith.index_cast %75 : i32 to index
    %c0_31 = arith.constant 0 : index
    %77 = vector.load %arg13[%76, %c0_31] : memref<64x256xf32, #tpu.memory_space<vmem>>, vector<8x256xf32>
    %cst_32 = arith.constant dense<0.000000e+00> : vector<8x256xf32>
    %78 = tpu.matmul %43, %7, %cst_32 {dimension_numbers = #tpu.dot_dimension_numbers<[1], [0], [0], [1], [0, 0, 1, 1], [], []>} : vector<8x64xf32>, vector<64x256xf32>, vector<8x256xf32> -> vector<8x256xf32>
    %79 = arith.addf %77, %78 : vector<8x256xf32>
    %80 = vector.extract_strided_slice %79 {offsets = [0, 0], sizes = [8, 128], strides = [1, 1]} : vector<8x256xf32> to vector<8x128xf32>
    %cst_33 = arith.constant 5.000000e-01 : f32
    %81 = vector.broadcast %cst_33 : f32 to vector<8x128xf32>
    %82 = arith.mulf %81, %80 : vector<8x128xf32>
    %83 = math.tanh %82 : vector<8x128xf32>
    %cst_34 = arith.constant 5.000000e-01 : f32
    %84 = vector.broadcast %cst_34 : f32 to vector<8x128xf32>
    %85 = arith.mulf %84, %83 : vector<8x128xf32>
    %cst_35 = arith.constant 5.000000e-01 : f32
    %86 = vector.broadcast %cst_35 : f32 to vector<8x128xf32>
    %87 = arith.addf %85, %86 : vector<8x128xf32>
    %88 = vector.extract_strided_slice %87 {offsets = [0, 0], sizes = [8, 64], strides = [1, 1]} : vector<8x128xf32> to vector<8x64xf32>
    %89 = vector.extract_strided_slice %87 {offsets = [0, 64], sizes = [8, 64], strides = [1, 1]} : vector<8x128xf32> to vector<8x64xf32>
    %90 = vector.extract_strided_slice %79 {offsets = [0, 128], sizes = [8, 64], strides = [1, 1]} : vector<8x256xf32> to vector<8x64xf32>
    %91 = math.tanh %90 : vector<8x64xf32>
    %92 = vector.extract_strided_slice %79 {offsets = [0, 192], sizes = [8, 64], strides = [1, 1]} : vector<8x256xf32> to vector<8x64xf32>
    %cst_36 = arith.constant 5.000000e-01 : f32
    %93 = vector.broadcast %cst_36 : f32 to vector<8x64xf32>
    %94 = arith.mulf %93, %92 : vector<8x64xf32>
    %95 = math.tanh %94 : vector<8x64xf32>
    %cst_37 = arith.constant 5.000000e-01 : f32
    %96 = vector.broadcast %cst_37 : f32 to vector<8x64xf32>
    %97 = arith.mulf %96, %95 : vector<8x64xf32>
    %cst_38 = arith.constant 5.000000e-01 : f32
    %98 = vector.broadcast %cst_38 : f32 to vector<8x64xf32>
    %99 = arith.addf %97, %98 : vector<8x64xf32>
    %100 = arith.mulf %89, %41 : vector<8x64xf32>
    %101 = arith.mulf %88, %91 : vector<8x64xf32>
    %102 = arith.addf %100, %101 : vector<8x64xf32>
    %103 = math.tanh %102 : vector<8x64xf32>
    %104 = arith.mulf %99, %103 : vector<8x64xf32>
    %105 = tpu.concatenate %104, %71 in 1 : vector<8x64xf32>, vector<8x64xf32> -> vector<8x128xf32>
    %cst_39 = arith.constant dense<0.000000e+00> : vector<8x256xf32>
    %106 = tpu.matmul %105, %8, %cst_39 {dimension_numbers = #tpu.dot_dimension_numbers<[1], [0], [0], [1], [0, 0, 1, 1], [], []>} : vector<8x128xf32>, vector<128x256xf32>, vector<8x256xf32> -> vector<8x256xf32>
    %107 = arith.addf %106, %11 : vector<8x256xf32>
    %108 = vector.extract_strided_slice %107 {offsets = [0, 0], sizes = [8, 128], strides = [1, 1]} : vector<8x256xf32> to vector<8x128xf32>
    %cst_40 = arith.constant 5.000000e-01 : f32
    %109 = vector.broadcast %cst_40 : f32 to vector<8x128xf32>
    %110 = arith.mulf %109, %108 : vector<8x128xf32>
    %111 = math.tanh %110 : vector<8x128xf32>
    %cst_41 = arith.constant 5.000000e-01 : f32
    %112 = vector.broadcast %cst_41 : f32 to vector<8x128xf32>
    %113 = arith.mulf %112, %111 : vector<8x128xf32>
    %cst_42 = arith.constant 5.000000e-01 : f32
    %114 = vector.broadcast %cst_42 : f32 to vector<8x128xf32>
    %115 = arith.addf %113, %114 : vector<8x128xf32>
    %116 = vector.extract_strided_slice %115 {offsets = [0, 0], sizes = [8, 64], strides = [1, 1]} : vector<8x128xf32> to vector<8x64xf32>
    %117 = vector.extract_strided_slice %115 {offsets = [0, 64], sizes = [8, 64], strides = [1, 1]} : vector<8x128xf32> to vector<8x64xf32>
    %118 = vector.extract_strided_slice %107 {offsets = [0, 128], sizes = [8, 64], strides = [1, 1]} : vector<8x256xf32> to vector<8x64xf32>
    %119 = math.tanh %118 : vector<8x64xf32>
    %120 = vector.extract_strided_slice %107 {offsets = [0, 192], sizes = [8, 64], strides = [1, 1]} : vector<8x256xf32> to vector<8x64xf32>
    %cst_43 = arith.constant 5.000000e-01 : f32
    %121 = vector.broadcast %cst_43 : f32 to vector<8x64xf32>
    %122 = arith.mulf %121, %120 : vector<8x64xf32>
    %123 = math.tanh %122 : vector<8x64xf32>
    %cst_44 = arith.constant 5.000000e-01 : f32
    %124 = vector.broadcast %cst_44 : f32 to vector<8x64xf32>
    %125 = arith.mulf %124, %123 : vector<8x64xf32>
    %cst_45 = arith.constant 5.000000e-01 : f32
    %126 = vector.broadcast %cst_45 : f32 to vector<8x64xf32>
    %127 = arith.addf %125, %126 : vector<8x64xf32>
    %128 = arith.mulf %117, %69 : vector<8x64xf32>
    %129 = arith.mulf %116, %119 : vector<8x64xf32>
    %130 = arith.addf %128, %129 : vector<8x64xf32>
    %131 = math.tanh %130 : vector<8x64xf32>
    %132 = arith.mulf %127, %131 : vector<8x64xf32>
    %133 = arith.index_cast %75 : i32 to index
    %c0_46 = arith.constant 0 : index
    %134 = vector.load %arg14[%133, %c0_46] : memref<64x64xf32, #tpu.memory_space<vmem>>, vector<8x64xf32>
    tpu.vector_store %arg14[%133, %c0_46], %132 {strides = array<i32>} : memref<64x64xf32, #tpu.memory_space<vmem>>, vector<8x64xf32>,
    %c2_i32 = arith.constant 2 : i32
    %c8_i32_47 = arith.constant 8 : i32
    %135 = arith.muli %c2_i32, %c8_i32_47 : i32
    %136 = tpu.assume_multiple %135, 8 : i32
    %137 = arith.index_cast %136 : i32 to index
    %c0_48 = arith.constant 0 : index
    %138 = vector.load %arg13[%137, %c0_48] : memref<64x256xf32, #tpu.memory_space<vmem>>, vector<8x256xf32>
    %cst_49 = arith.constant dense<0.000000e+00> : vector<8x256xf32>
    %139 = tpu.matmul %104, %7, %cst_49 {dimension_numbers = #tpu.dot_dimension_numbers<[1], [0], [0], [1], [0, 0, 1, 1], [], []>} : vector<8x64xf32>, vector<64x256xf32>, vector<8x256xf32> -> vector<8x256xf32>
    %140 = arith.addf %138, %139 : vector<8x256xf32>
    %141 = vector.extract_strided_slice %140 {offsets = [0, 0], sizes = [8, 128], strides = [1, 1]} : vector<8x256xf32> to vector<8x128xf32>
    %cst_50 = arith.constant 5.000000e-01 : f32
    %142 = vector.broadcast %cst_50 : f32 to vector<8x128xf32>
    %143 = arith.mulf %142, %141 : vector<8x128xf32>
    %144 = math.tanh %143 : vector<8x128xf32>
    %cst_51 = arith.constant 5.000000e-01 : f32
    %145 = vector.broadcast %cst_51 : f32 to vector<8x128xf32>
    %146 = arith.mulf %145, %144 : vector<8x128xf32>
    %cst_52 = arith.constant 5.000000e-01 : f32
    %147 = vector.broadcast %cst_52 : f32 to vector<8x128xf32>
    %148 = arith.addf %146, %147 : vector<8x128xf32>
    %149 = vector.extract_strided_slice %148 {offsets = [0, 0], sizes = [8, 64], strides = [1, 1]} : vector<8x128xf32> to vector<8x64xf32>
    %150 = vector.extract_strided_slice %148 {offsets = [0, 64], sizes = [8, 64], strides = [1, 1]} : vector<8x128xf32> to vector<8x64xf32>
    %151 = vector.extract_strided_slice %140 {offsets = [0, 128], sizes = [8, 64], strides = [1, 1]} : vector<8x256xf32> to vector<8x64xf32>
    %152 = math.tanh %151 : vector<8x64xf32>
    %153 = vector.extract_strided_slice %140 {offsets = [0, 192], sizes = [8, 64], strides = [1, 1]} : vector<8x256xf32> to vector<8x64xf32>
    %cst_53 = arith.constant 5.000000e-01 : f32
    %154 = vector.broadcast %cst_53 : f32 to vector<8x64xf32>
    %155 = arith.mulf %154, %153 : vector<8x64xf32>
    %156 = math.tanh %155 : vector<8x64xf32>
    %cst_54 = arith.constant 5.000000e-01 : f32
    %157 = vector.broadcast %cst_54 : f32 to vector<8x64xf32>
    %158 = arith.mulf %157, %156 : vector<8x64xf32>
    %cst_55 = arith.constant 5.000000e-01 : f32
    %159 = vector.broadcast %cst_55 : f32 to vector<8x64xf32>
    %160 = arith.addf %158, %159 : vector<8x64xf32>
    %161 = arith.mulf %150, %102 : vector<8x64xf32>
    %162 = arith.mulf %149, %152 : vector<8x64xf32>
    %163 = arith.addf %161, %162 : vector<8x64xf32>
    %164 = math.tanh %163 : vector<8x64xf32>
    %165 = arith.mulf %160, %164 : vector<8x64xf32>
    %166 = tpu.concatenate %165, %132 in 1 : vector<8x64xf32>, vector<8x64xf32> -> vector<8x128xf32>
    %cst_56 = arith.constant dense<0.000000e+00> : vector<8x256xf32>
    %167 = tpu.matmul %166, %8, %cst_56 {dimension_numbers = #tpu.dot_dimension_numbers<[1], [0], [0], [1], [0, 0, 1, 1], [], []>} : vector<8x128xf32>, vector<128x256xf32>, vector<8x256xf32> -> vector<8x256xf32>
    %168 = arith.addf %167, %11 : vector<8x256xf32>
    %169 = vector.extract_strided_slice %168 {offsets = [0, 0], sizes = [8, 128], strides = [1, 1]} : vector<8x256xf32> to vector<8x128xf32>
    %cst_57 = arith.constant 5.000000e-01 : f32
    %170 = vector.broadcast %cst_57 : f32 to vector<8x128xf32>
    %171 = arith.mulf %170, %169 : vector<8x128xf32>
    %172 = math.tanh %171 : vector<8x128xf32>
    %cst_58 = arith.constant 5.000000e-01 : f32
    %173 = vector.broadcast %cst_58 : f32 to vector<8x128xf32>
    %174 = arith.mulf %173, %172 : vector<8x128xf32>
    %cst_59 = arith.constant 5.000000e-01 : f32
    %175 = vector.broadcast %cst_59 : f32 to vector<8x128xf32>
    %176 = arith.addf %174, %175 : vector<8x128xf32>
    %177 = vector.extract_strided_slice %176 {offsets = [0, 0], sizes = [8, 64], strides = [1, 1]} : vector<8x128xf32> to vector<8x64xf32>
    %178 = vector.extract_strided_slice %176 {offsets = [0, 64], sizes = [8, 64], strides = [1, 1]} : vector<8x128xf32> to vector<8x64xf32>
    %179 = vector.extract_strided_slice %168 {offsets = [0, 128], sizes = [8, 64], strides = [1, 1]} : vector<8x256xf32> to vector<8x64xf32>
    %180 = math.tanh %179 : vector<8x64xf32>
    %181 = vector.extract_strided_slice %168 {offsets = [0, 192], sizes = [8, 64], strides = [1, 1]} : vector<8x256xf32> to vector<8x64xf32>
    %cst_60 = arith.constant 5.000000e-01 : f32
    %182 = vector.broadcast %cst_60 : f32 to vector<8x64xf32>
    %183 = arith.mulf %182, %181 : vector<8x64xf32>
    %184 = math.tanh %183 : vector<8x64xf32>
    %cst_61 = arith.constant 5.000000e-01 : f32
    %185 = vector.broadcast %cst_61 : f32 to vector<8x64xf32>
    %186 = arith.mulf %185, %184 : vector<8x64xf32>
    %cst_62 = arith.constant 5.000000e-01 : f32
    %187 = vector.broadcast %cst_62 : f32 to vector<8x64xf32>
    %188 = arith.addf %186, %187 : vector<8x64xf32>
    %189 = arith.mulf %178, %130 : vector<8x64xf32>
    %190 = arith.mulf %177, %180 : vector<8x64xf32>
    %191 = arith.addf %189, %190 : vector<8x64xf32>
    %192 = math.tanh %191 : vector<8x64xf32>
    %193 = arith.mulf %188, %192 : vector<8x64xf32>
    %194 = arith.index_cast %136 : i32 to index
    %c0_63 = arith.constant 0 : index
    %195 = vector.load %arg14[%194, %c0_63] : memref<64x64xf32, #tpu.memory_space<vmem>>, vector<8x64xf32>
    tpu.vector_store %arg14[%194, %c0_63], %193 {strides = array<i32>} : memref<64x64xf32, #tpu.memory_space<vmem>>, vector<8x64xf32>,
    %c3_i32 = arith.constant 3 : i32
    %c8_i32_64 = arith.constant 8 : i32
    %196 = arith.muli %c3_i32, %c8_i32_64 : i32
    %197 = tpu.assume_multiple %196, 8 : i32
    %198 = arith.index_cast %197 : i32 to index
    %c0_65 = arith.constant 0 : index
    %199 = vector.load %arg13[%198, %c0_65] : memref<64x256xf32, #tpu.memory_space<vmem>>, vector<8x256xf32>
    %cst_66 = arith.constant dense<0.000000e+00> : vector<8x256xf32>
    %200 = tpu.matmul %165, %7, %cst_66 {dimension_numbers = #tpu.dot_dimension_numbers<[1], [0], [0], [1], [0, 0, 1, 1], [], []>} : vector<8x64xf32>, vector<64x256xf32>, vector<8x256xf32> -> vector<8x256xf32>
    %201 = arith.addf %199, %200 : vector<8x256xf32>
    %202 = vector.extract_strided_slice %201 {offsets = [0, 0], sizes = [8, 128], strides = [1, 1]} : vector<8x256xf32> to vector<8x128xf32>
    %cst_67 = arith.constant 5.000000e-01 : f32
    %203 = vector.broadcast %cst_67 : f32 to vector<8x128xf32>
    %204 = arith.mulf %203, %202 : vector<8x128xf32>
    %205 = math.tanh %204 : vector<8x128xf32>
    %cst_68 = arith.constant 5.000000e-01 : f32
    %206 = vector.broadcast %cst_68 : f32 to vector<8x128xf32>
    %207 = arith.mulf %206, %205 : vector<8x128xf32>
    %cst_69 = arith.constant 5.000000e-01 : f32
    %208 = vector.broadcast %cst_69 : f32 to vector<8x128xf32>
    %209 = arith.addf %207, %208 : vector<8x128xf32>
    %210 = vector.extract_strided_slice %209 {offsets = [0, 0], sizes = [8, 64], strides = [1, 1]} : vector<8x128xf32> to vector<8x64xf32>
    %211 = vector.extract_strided_slice %209 {offsets = [0, 64], sizes = [8, 64], strides = [1, 1]} : vector<8x128xf32> to vector<8x64xf32>
    %212 = vector.extract_strided_slice %201 {offsets = [0, 128], sizes = [8, 64], strides = [1, 1]} : vector<8x256xf32> to vector<8x64xf32>
    %213 = math.tanh %212 : vector<8x64xf32>
    %214 = vector.extract_strided_slice %201 {offsets = [0, 192], sizes = [8, 64], strides = [1, 1]} : vector<8x256xf32> to vector<8x64xf32>
    %cst_70 = arith.constant 5.000000e-01 : f32
    %215 = vector.broadcast %cst_70 : f32 to vector<8x64xf32>
    %216 = arith.mulf %215, %214 : vector<8x64xf32>
    %217 = math.tanh %216 : vector<8x64xf32>
    %cst_71 = arith.constant 5.000000e-01 : f32
    %218 = vector.broadcast %cst_71 : f32 to vector<8x64xf32>
    %219 = arith.mulf %218, %217 : vector<8x64xf32>
    %cst_72 = arith.constant 5.000000e-01 : f32
    %220 = vector.broadcast %cst_72 : f32 to vector<8x64xf32>
    %221 = arith.addf %219, %220 : vector<8x64xf32>
    %222 = arith.mulf %211, %163 : vector<8x64xf32>
    %223 = arith.mulf %210, %213 : vector<8x64xf32>
    %224 = arith.addf %222, %223 : vector<8x64xf32>
    %225 = math.tanh %224 : vector<8x64xf32>
    %226 = arith.mulf %221, %225 : vector<8x64xf32>
    %227 = tpu.concatenate %226, %193 in 1 : vector<8x64xf32>, vector<8x64xf32> -> vector<8x128xf32>
    %cst_73 = arith.constant dense<0.000000e+00> : vector<8x256xf32>
    %228 = tpu.matmul %227, %8, %cst_73 {dimension_numbers = #tpu.dot_dimension_numbers<[1], [0], [0], [1], [0, 0, 1, 1], [], []>} : vector<8x128xf32>, vector<128x256xf32>, vector<8x256xf32> -> vector<8x256xf32>
    %229 = arith.addf %228, %11 : vector<8x256xf32>
    %230 = vector.extract_strided_slice %229 {offsets = [0, 0], sizes = [8, 128], strides = [1, 1]} : vector<8x256xf32> to vector<8x128xf32>
    %cst_74 = arith.constant 5.000000e-01 : f32
    %231 = vector.broadcast %cst_74 : f32 to vector<8x128xf32>
    %232 = arith.mulf %231, %230 : vector<8x128xf32>
    %233 = math.tanh %232 : vector<8x128xf32>
    %cst_75 = arith.constant 5.000000e-01 : f32
    %234 = vector.broadcast %cst_75 : f32 to vector<8x128xf32>
    %235 = arith.mulf %234, %233 : vector<8x128xf32>
    %cst_76 = arith.constant 5.000000e-01 : f32
    %236 = vector.broadcast %cst_76 : f32 to vector<8x128xf32>
    %237 = arith.addf %235, %236 : vector<8x128xf32>
    %238 = vector.extract_strided_slice %237 {offsets = [0, 0], sizes = [8, 64], strides = [1, 1]} : vector<8x128xf32> to vector<8x64xf32>
    %239 = vector.extract_strided_slice %237 {offsets = [0, 64], sizes = [8, 64], strides = [1, 1]} : vector<8x128xf32> to vector<8x64xf32>
    %240 = vector.extract_strided_slice %229 {offsets = [0, 128], sizes = [8, 64], strides = [1, 1]} : vector<8x256xf32> to vector<8x64xf32>
    %241 = math.tanh %240 : vector<8x64xf32>
    %242 = vector.extract_strided_slice %229 {offsets = [0, 192], sizes = [8, 64], strides = [1, 1]} : vector<8x256xf32> to vector<8x64xf32>
    %cst_77 = arith.constant 5.000000e-01 : f32
    %243 = vector.broadcast %cst_77 : f32 to vector<8x64xf32>
    %244 = arith.mulf %243, %242 : vector<8x64xf32>
    %245 = math.tanh %244 : vector<8x64xf32>
    %cst_78 = arith.constant 5.000000e-01 : f32
    %246 = vector.broadcast %cst_78 : f32 to vector<8x64xf32>
    %247 = arith.mulf %246, %245 : vector<8x64xf32>
    %cst_79 = arith.constant 5.000000e-01 : f32
    %248 = vector.broadcast %cst_79 : f32 to vector<8x64xf32>
    %249 = arith.addf %247, %248 : vector<8x64xf32>
    %250 = arith.mulf %239, %191 : vector<8x64xf32>
    %251 = arith.mulf %238, %241 : vector<8x64xf32>
    %252 = arith.addf %250, %251 : vector<8x64xf32>
    %253 = math.tanh %252 : vector<8x64xf32>
    %254 = arith.mulf %249, %253 : vector<8x64xf32>
    %255 = arith.index_cast %197 : i32 to index
    %c0_80 = arith.constant 0 : index
    %256 = vector.load %arg14[%255, %c0_80] : memref<64x64xf32, #tpu.memory_space<vmem>>, vector<8x64xf32>
    tpu.vector_store %arg14[%255, %c0_80], %254 {strides = array<i32>} : memref<64x64xf32, #tpu.memory_space<vmem>>, vector<8x64xf32>,
    %c4_i32 = arith.constant 4 : i32
    %c8_i32_81 = arith.constant 8 : i32
    %257 = arith.muli %c4_i32, %c8_i32_81 : i32
    %258 = tpu.assume_multiple %257, 8 : i32
    %259 = arith.index_cast %258 : i32 to index
    %c0_82 = arith.constant 0 : index
    %260 = vector.load %arg13[%259, %c0_82] : memref<64x256xf32, #tpu.memory_space<vmem>>, vector<8x256xf32>
    %cst_83 = arith.constant dense<0.000000e+00> : vector<8x256xf32>
    %261 = tpu.matmul %226, %7, %cst_83 {dimension_numbers = #tpu.dot_dimension_numbers<[1], [0], [0], [1], [0, 0, 1, 1], [], []>} : vector<8x64xf32>, vector<64x256xf32>, vector<8x256xf32> -> vector<8x256xf32>
    %262 = arith.addf %260, %261 : vector<8x256xf32>
    %263 = vector.extract_strided_slice %262 {offsets = [0, 0], sizes = [8, 128], strides = [1, 1]} : vector<8x256xf32> to vector<8x128xf32>
    %cst_84 = arith.constant 5.000000e-01 : f32
    %264 = vector.broadcast %cst_84 : f32 to vector<8x128xf32>
    %265 = arith.mulf %264, %263 : vector<8x128xf32>
    %266 = math.tanh %265 : vector<8x128xf32>
    %cst_85 = arith.constant 5.000000e-01 : f32
    %267 = vector.broadcast %cst_85 : f32 to vector<8x128xf32>
    %268 = arith.mulf %267, %266 : vector<8x128xf32>
    %cst_86 = arith.constant 5.000000e-01 : f32
    %269 = vector.broadcast %cst_86 : f32 to vector<8x128xf32>
    %270 = arith.addf %268, %269 : vector<8x128xf32>
    %271 = vector.extract_strided_slice %270 {offsets = [0, 0], sizes = [8, 64], strides = [1, 1]} : vector<8x128xf32> to vector<8x64xf32>
    %272 = vector.extract_strided_slice %270 {offsets = [0, 64], sizes = [8, 64], strides = [1, 1]} : vector<8x128xf32> to vector<8x64xf32>
    %273 = vector.extract_strided_slice %262 {offsets = [0, 128], sizes = [8, 64], strides = [1, 1]} : vector<8x256xf32> to vector<8x64xf32>
    %274 = math.tanh %273 : vector<8x64xf32>
    %275 = vector.extract_strided_slice %262 {offsets = [0, 192], sizes = [8, 64], strides = [1, 1]} : vector<8x256xf32> to vector<8x64xf32>
    %cst_87 = arith.constant 5.000000e-01 : f32
    %276 = vector.broadcast %cst_87 : f32 to vector<8x64xf32>
    %277 = arith.mulf %276, %275 : vector<8x64xf32>
    %278 = math.tanh %277 : vector<8x64xf32>
    %cst_88 = arith.constant 5.000000e-01 : f32
    %279 = vector.broadcast %cst_88 : f32 to vector<8x64xf32>
    %280 = arith.mulf %279, %278 : vector<8x64xf32>
    %cst_89 = arith.constant 5.000000e-01 : f32
    %281 = vector.broadcast %cst_89 : f32 to vector<8x64xf32>
    %282 = arith.addf %280, %281 : vector<8x64xf32>
    %283 = arith.mulf %272, %224 : vector<8x64xf32>
    %284 = arith.mulf %271, %274 : vector<8x64xf32>
    %285 = arith.addf %283, %284 : vector<8x64xf32>
    %286 = math.tanh %285 : vector<8x64xf32>
    %287 = arith.mulf %282, %286 : vector<8x64xf32>
    %288 = tpu.concatenate %287, %254 in 1 : vector<8x64xf32>, vector<8x64xf32> -> vector<8x128xf32>
    %cst_90 = arith.constant dense<0.000000e+00> : vector<8x256xf32>
    %289 = tpu.matmul %288, %8, %cst_90 {dimension_numbers = #tpu.dot_dimension_numbers<[1], [0], [0], [1], [0, 0, 1, 1], [], []>} : vector<8x128xf32>, vector<128x256xf32>, vector<8x256xf32> -> vector<8x256xf32>
    %290 = arith.addf %289, %11 : vector<8x256xf32>
    %291 = vector.extract_strided_slice %290 {offsets = [0, 0], sizes = [8, 128], strides = [1, 1]} : vector<8x256xf32> to vector<8x128xf32>
    %cst_91 = arith.constant 5.000000e-01 : f32
    %292 = vector.broadcast %cst_91 : f32 to vector<8x128xf32>
    %293 = arith.mulf %292, %291 : vector<8x128xf32>
    %294 = math.tanh %293 : vector<8x128xf32>
    %cst_92 = arith.constant 5.000000e-01 : f32
    %295 = vector.broadcast %cst_92 : f32 to vector<8x128xf32>
    %296 = arith.mulf %295, %294 : vector<8x128xf32>
    %cst_93 = arith.constant 5.000000e-01 : f32
    %297 = vector.broadcast %cst_93 : f32 to vector<8x128xf32>
    %298 = arith.addf %296, %297 : vector<8x128xf32>
    %299 = vector.extract_strided_slice %298 {offsets = [0, 0], sizes = [8, 64], strides = [1, 1]} : vector<8x128xf32> to vector<8x64xf32>
    %300 = vector.extract_strided_slice %298 {offsets = [0, 64], sizes = [8, 64], strides = [1, 1]} : vector<8x128xf32> to vector<8x64xf32>
    %301 = vector.extract_strided_slice %290 {offsets = [0, 128], sizes = [8, 64], strides = [1, 1]} : vector<8x256xf32> to vector<8x64xf32>
    %302 = math.tanh %301 : vector<8x64xf32>
    %303 = vector.extract_strided_slice %290 {offsets = [0, 192], sizes = [8, 64], strides = [1, 1]} : vector<8x256xf32> to vector<8x64xf32>
    %cst_94 = arith.constant 5.000000e-01 : f32
    %304 = vector.broadcast %cst_94 : f32 to vector<8x64xf32>
    %305 = arith.mulf %304, %303 : vector<8x64xf32>
    %306 = math.tanh %305 : vector<8x64xf32>
    %cst_95 = arith.constant 5.000000e-01 : f32
    %307 = vector.broadcast %cst_95 : f32 to vector<8x64xf32>
    %308 = arith.mulf %307, %306 : vector<8x64xf32>
    %cst_96 = arith.constant 5.000000e-01 : f32
    %309 = vector.broadcast %cst_96 : f32 to vector<8x64xf32>
    %310 = arith.addf %308, %309 : vector<8x64xf32>
    %311 = arith.mulf %300, %252 : vector<8x64xf32>
    %312 = arith.mulf %299, %302 : vector<8x64xf32>
    %313 = arith.addf %311, %312 : vector<8x64xf32>
    %314 = math.tanh %313 : vector<8x64xf32>
    %315 = arith.mulf %310, %314 : vector<8x64xf32>
    %316 = arith.index_cast %258 : i32 to index
    %c0_97 = arith.constant 0 : index
    %317 = vector.load %arg14[%316, %c0_97] : memref<64x64xf32, #tpu.memory_space<vmem>>, vector<8x64xf32>
    tpu.vector_store %arg14[%316, %c0_97], %315 {strides = array<i32>} : memref<64x64xf32, #tpu.memory_space<vmem>>, vector<8x64xf32>,
    %c5_i32 = arith.constant 5 : i32
    %c8_i32_98 = arith.constant 8 : i32
    %318 = arith.muli %c5_i32, %c8_i32_98 : i32
    %319 = tpu.assume_multiple %318, 8 : i32
    %320 = arith.index_cast %319 : i32 to index
    %c0_99 = arith.constant 0 : index
    %321 = vector.load %arg13[%320, %c0_99] : memref<64x256xf32, #tpu.memory_space<vmem>>, vector<8x256xf32>
    %cst_100 = arith.constant dense<0.000000e+00> : vector<8x256xf32>
    %322 = tpu.matmul %287, %7, %cst_100 {dimension_numbers = #tpu.dot_dimension_numbers<[1], [0], [0], [1], [0, 0, 1, 1], [], []>} : vector<8x64xf32>, vector<64x256xf32>, vector<8x256xf32> -> vector<8x256xf32>
    %323 = arith.addf %321, %322 : vector<8x256xf32>
    %324 = vector.extract_strided_slice %323 {offsets = [0, 0], sizes = [8, 128], strides = [1, 1]} : vector<8x256xf32> to vector<8x128xf32>
    %cst_101 = arith.constant 5.000000e-01 : f32
    %325 = vector.broadcast %cst_101 : f32 to vector<8x128xf32>
    %326 = arith.mulf %325, %324 : vector<8x128xf32>
    %327 = math.tanh %326 : vector<8x128xf32>
    %cst_102 = arith.constant 5.000000e-01 : f32
    %328 = vector.broadcast %cst_102 : f32 to vector<8x128xf32>
    %329 = arith.mulf %328, %327 : vector<8x128xf32>
    %cst_103 = arith.constant 5.000000e-01 : f32
    %330 = vector.broadcast %cst_103 : f32 to vector<8x128xf32>
    %331 = arith.addf %329, %330 : vector<8x128xf32>
    %332 = vector.extract_strided_slice %331 {offsets = [0, 0], sizes = [8, 64], strides = [1, 1]} : vector<8x128xf32> to vector<8x64xf32>
    %333 = vector.extract_strided_slice %331 {offsets = [0, 64], sizes = [8, 64], strides = [1, 1]} : vector<8x128xf32> to vector<8x64xf32>
    %334 = vector.extract_strided_slice %323 {offsets = [0, 128], sizes = [8, 64], strides = [1, 1]} : vector<8x256xf32> to vector<8x64xf32>
    %335 = math.tanh %334 : vector<8x64xf32>
    %336 = vector.extract_strided_slice %323 {offsets = [0, 192], sizes = [8, 64], strides = [1, 1]} : vector<8x256xf32> to vector<8x64xf32>
    %cst_104 = arith.constant 5.000000e-01 : f32
    %337 = vector.broadcast %cst_104 : f32 to vector<8x64xf32>
    %338 = arith.mulf %337, %336 : vector<8x64xf32>
    %339 = math.tanh %338 : vector<8x64xf32>
    %cst_105 = arith.constant 5.000000e-01 : f32
    %340 = vector.broadcast %cst_105 : f32 to vector<8x64xf32>
    %341 = arith.mulf %340, %339 : vector<8x64xf32>
    %cst_106 = arith.constant 5.000000e-01 : f32
    %342 = vector.broadcast %cst_106 : f32 to vector<8x64xf32>
    %343 = arith.addf %341, %342 : vector<8x64xf32>
    %344 = arith.mulf %333, %285 : vector<8x64xf32>
    %345 = arith.mulf %332, %335 : vector<8x64xf32>
    %346 = arith.addf %344, %345 : vector<8x64xf32>
    %347 = math.tanh %346 : vector<8x64xf32>
    %348 = arith.mulf %343, %347 : vector<8x64xf32>
    %349 = tpu.concatenate %348, %315 in 1 : vector<8x64xf32>, vector<8x64xf32> -> vector<8x128xf32>
    %cst_107 = arith.constant dense<0.000000e+00> : vector<8x256xf32>
    %350 = tpu.matmul %349, %8, %cst_107 {dimension_numbers = #tpu.dot_dimension_numbers<[1], [0], [0], [1], [0, 0, 1, 1], [], []>} : vector<8x128xf32>, vector<128x256xf32>, vector<8x256xf32> -> vector<8x256xf32>
    %351 = arith.addf %350, %11 : vector<8x256xf32>
    %352 = vector.extract_strided_slice %351 {offsets = [0, 0], sizes = [8, 128], strides = [1, 1]} : vector<8x256xf32> to vector<8x128xf32>
    %cst_108 = arith.constant 5.000000e-01 : f32
    %353 = vector.broadcast %cst_108 : f32 to vector<8x128xf32>
    %354 = arith.mulf %353, %352 : vector<8x128xf32>
    %355 = math.tanh %354 : vector<8x128xf32>
    %cst_109 = arith.constant 5.000000e-01 : f32
    %356 = vector.broadcast %cst_109 : f32 to vector<8x128xf32>
    %357 = arith.mulf %356, %355 : vector<8x128xf32>
    %cst_110 = arith.constant 5.000000e-01 : f32
    %358 = vector.broadcast %cst_110 : f32 to vector<8x128xf32>
    %359 = arith.addf %357, %358 : vector<8x128xf32>
    %360 = vector.extract_strided_slice %359 {offsets = [0, 0], sizes = [8, 64], strides = [1, 1]} : vector<8x128xf32> to vector<8x64xf32>
    %361 = vector.extract_strided_slice %359 {offsets = [0, 64], sizes = [8, 64], strides = [1, 1]} : vector<8x128xf32> to vector<8x64xf32>
    %362 = vector.extract_strided_slice %351 {offsets = [0, 128], sizes = [8, 64], strides = [1, 1]} : vector<8x256xf32> to vector<8x64xf32>
    %363 = math.tanh %362 : vector<8x64xf32>
    %364 = vector.extract_strided_slice %351 {offsets = [0, 192], sizes = [8, 64], strides = [1, 1]} : vector<8x256xf32> to vector<8x64xf32>
    %cst_111 = arith.constant 5.000000e-01 : f32
    %365 = vector.broadcast %cst_111 : f32 to vector<8x64xf32>
    %366 = arith.mulf %365, %364 : vector<8x64xf32>
    %367 = math.tanh %366 : vector<8x64xf32>
    %cst_112 = arith.constant 5.000000e-01 : f32
    %368 = vector.broadcast %cst_112 : f32 to vector<8x64xf32>
    %369 = arith.mulf %368, %367 : vector<8x64xf32>
    %cst_113 = arith.constant 5.000000e-01 : f32
    %370 = vector.broadcast %cst_113 : f32 to vector<8x64xf32>
    %371 = arith.addf %369, %370 : vector<8x64xf32>
    %372 = arith.mulf %361, %313 : vector<8x64xf32>
    %373 = arith.mulf %360, %363 : vector<8x64xf32>
    %374 = arith.addf %372, %373 : vector<8x64xf32>
    %375 = math.tanh %374 : vector<8x64xf32>
    %376 = arith.mulf %371, %375 : vector<8x64xf32>
    %377 = arith.index_cast %319 : i32 to index
    %c0_114 = arith.constant 0 : index
    %378 = vector.load %arg14[%377, %c0_114] : memref<64x64xf32, #tpu.memory_space<vmem>>, vector<8x64xf32>
    tpu.vector_store %arg14[%377, %c0_114], %376 {strides = array<i32>} : memref<64x64xf32, #tpu.memory_space<vmem>>, vector<8x64xf32>,
    %c6_i32 = arith.constant 6 : i32
    %c8_i32_115 = arith.constant 8 : i32
    %379 = arith.muli %c6_i32, %c8_i32_115 : i32
    %380 = tpu.assume_multiple %379, 8 : i32
    %381 = arith.index_cast %380 : i32 to index
    %c0_116 = arith.constant 0 : index
    %382 = vector.load %arg13[%381, %c0_116] : memref<64x256xf32, #tpu.memory_space<vmem>>, vector<8x256xf32>
    %cst_117 = arith.constant dense<0.000000e+00> : vector<8x256xf32>
    %383 = tpu.matmul %348, %7, %cst_117 {dimension_numbers = #tpu.dot_dimension_numbers<[1], [0], [0], [1], [0, 0, 1, 1], [], []>} : vector<8x64xf32>, vector<64x256xf32>, vector<8x256xf32> -> vector<8x256xf32>
    %384 = arith.addf %382, %383 : vector<8x256xf32>
    %385 = vector.extract_strided_slice %384 {offsets = [0, 0], sizes = [8, 128], strides = [1, 1]} : vector<8x256xf32> to vector<8x128xf32>
    %cst_118 = arith.constant 5.000000e-01 : f32
    %386 = vector.broadcast %cst_118 : f32 to vector<8x128xf32>
    %387 = arith.mulf %386, %385 : vector<8x128xf32>
    %388 = math.tanh %387 : vector<8x128xf32>
    %cst_119 = arith.constant 5.000000e-01 : f32
    %389 = vector.broadcast %cst_119 : f32 to vector<8x128xf32>
    %390 = arith.mulf %389, %388 : vector<8x128xf32>
    %cst_120 = arith.constant 5.000000e-01 : f32
    %391 = vector.broadcast %cst_120 : f32 to vector<8x128xf32>
    %392 = arith.addf %390, %391 : vector<8x128xf32>
    %393 = vector.extract_strided_slice %392 {offsets = [0, 0], sizes = [8, 64], strides = [1, 1]} : vector<8x128xf32> to vector<8x64xf32>
    %394 = vector.extract_strided_slice %392 {offsets = [0, 64], sizes = [8, 64], strides = [1, 1]} : vector<8x128xf32> to vector<8x64xf32>
    %395 = vector.extract_strided_slice %384 {offsets = [0, 128], sizes = [8, 64], strides = [1, 1]} : vector<8x256xf32> to vector<8x64xf32>
    %396 = math.tanh %395 : vector<8x64xf32>
    %397 = vector.extract_strided_slice %384 {offsets = [0, 192], sizes = [8, 64], strides = [1, 1]} : vector<8x256xf32> to vector<8x64xf32>
    %cst_121 = arith.constant 5.000000e-01 : f32
    %398 = vector.broadcast %cst_121 : f32 to vector<8x64xf32>
    %399 = arith.mulf %398, %397 : vector<8x64xf32>
    %400 = math.tanh %399 : vector<8x64xf32>
    %cst_122 = arith.constant 5.000000e-01 : f32
    %401 = vector.broadcast %cst_122 : f32 to vector<8x64xf32>
    %402 = arith.mulf %401, %400 : vector<8x64xf32>
    %cst_123 = arith.constant 5.000000e-01 : f32
    %403 = vector.broadcast %cst_123 : f32 to vector<8x64xf32>
    %404 = arith.addf %402, %403 : vector<8x64xf32>
    %405 = arith.mulf %394, %346 : vector<8x64xf32>
    %406 = arith.mulf %393, %396 : vector<8x64xf32>
    %407 = arith.addf %405, %406 : vector<8x64xf32>
    %408 = math.tanh %407 : vector<8x64xf32>
    %409 = arith.mulf %404, %408 : vector<8x64xf32>
    %410 = tpu.concatenate %409, %376 in 1 : vector<8x64xf32>, vector<8x64xf32> -> vector<8x128xf32>
    %cst_124 = arith.constant dense<0.000000e+00> : vector<8x256xf32>
    %411 = tpu.matmul %410, %8, %cst_124 {dimension_numbers = #tpu.dot_dimension_numbers<[1], [0], [0], [1], [0, 0, 1, 1], [], []>} : vector<8x128xf32>, vector<128x256xf32>, vector<8x256xf32> -> vector<8x256xf32>
    %412 = arith.addf %411, %11 : vector<8x256xf32>
    %413 = vector.extract_strided_slice %412 {offsets = [0, 0], sizes = [8, 128], strides = [1, 1]} : vector<8x256xf32> to vector<8x128xf32>
    %cst_125 = arith.constant 5.000000e-01 : f32
    %414 = vector.broadcast %cst_125 : f32 to vector<8x128xf32>
    %415 = arith.mulf %414, %413 : vector<8x128xf32>
    %416 = math.tanh %415 : vector<8x128xf32>
    %cst_126 = arith.constant 5.000000e-01 : f32
    %417 = vector.broadcast %cst_126 : f32 to vector<8x128xf32>
    %418 = arith.mulf %417, %416 : vector<8x128xf32>
    %cst_127 = arith.constant 5.000000e-01 : f32
    %419 = vector.broadcast %cst_127 : f32 to vector<8x128xf32>
    %420 = arith.addf %418, %419 : vector<8x128xf32>
    %421 = vector.extract_strided_slice %420 {offsets = [0, 0], sizes = [8, 64], strides = [1, 1]} : vector<8x128xf32> to vector<8x64xf32>
    %422 = vector.extract_strided_slice %420 {offsets = [0, 64], sizes = [8, 64], strides = [1, 1]} : vector<8x128xf32> to vector<8x64xf32>
    %423 = vector.extract_strided_slice %412 {offsets = [0, 128], sizes = [8, 64], strides = [1, 1]} : vector<8x256xf32> to vector<8x64xf32>
    %424 = math.tanh %423 : vector<8x64xf32>
    %425 = vector.extract_strided_slice %412 {offsets = [0, 192], sizes = [8, 64], strides = [1, 1]} : vector<8x256xf32> to vector<8x64xf32>
    %cst_128 = arith.constant 5.000000e-01 : f32
    %426 = vector.broadcast %cst_128 : f32 to vector<8x64xf32>
    %427 = arith.mulf %426, %425 : vector<8x64xf32>
    %428 = math.tanh %427 : vector<8x64xf32>
    %cst_129 = arith.constant 5.000000e-01 : f32
    %429 = vector.broadcast %cst_129 : f32 to vector<8x64xf32>
    %430 = arith.mulf %429, %428 : vector<8x64xf32>
    %cst_130 = arith.constant 5.000000e-01 : f32
    %431 = vector.broadcast %cst_130 : f32 to vector<8x64xf32>
    %432 = arith.addf %430, %431 : vector<8x64xf32>
    %433 = arith.mulf %422, %374 : vector<8x64xf32>
    %434 = arith.mulf %421, %424 : vector<8x64xf32>
    %435 = arith.addf %433, %434 : vector<8x64xf32>
    %436 = math.tanh %435 : vector<8x64xf32>
    %437 = arith.mulf %432, %436 : vector<8x64xf32>
    %438 = arith.index_cast %380 : i32 to index
    %c0_131 = arith.constant 0 : index
    %439 = vector.load %arg14[%438, %c0_131] : memref<64x64xf32, #tpu.memory_space<vmem>>, vector<8x64xf32>
    tpu.vector_store %arg14[%438, %c0_131], %437 {strides = array<i32>} : memref<64x64xf32, #tpu.memory_space<vmem>>, vector<8x64xf32>,
    %c7_i32 = arith.constant 7 : i32
    %c8_i32_132 = arith.constant 8 : i32
    %440 = arith.muli %c7_i32, %c8_i32_132 : i32
    %441 = tpu.assume_multiple %440, 8 : i32
    %442 = arith.index_cast %441 : i32 to index
    %c0_133 = arith.constant 0 : index
    %443 = vector.load %arg13[%442, %c0_133] : memref<64x256xf32, #tpu.memory_space<vmem>>, vector<8x256xf32>
    %cst_134 = arith.constant dense<0.000000e+00> : vector<8x256xf32>
    %444 = tpu.matmul %409, %7, %cst_134 {dimension_numbers = #tpu.dot_dimension_numbers<[1], [0], [0], [1], [0, 0, 1, 1], [], []>} : vector<8x64xf32>, vector<64x256xf32>, vector<8x256xf32> -> vector<8x256xf32>
    %445 = arith.addf %443, %444 : vector<8x256xf32>
    %446 = vector.extract_strided_slice %445 {offsets = [0, 0], sizes = [8, 128], strides = [1, 1]} : vector<8x256xf32> to vector<8x128xf32>
    %cst_135 = arith.constant 5.000000e-01 : f32
    %447 = vector.broadcast %cst_135 : f32 to vector<8x128xf32>
    %448 = arith.mulf %447, %446 : vector<8x128xf32>
    %449 = math.tanh %448 : vector<8x128xf32>
    %cst_136 = arith.constant 5.000000e-01 : f32
    %450 = vector.broadcast %cst_136 : f32 to vector<8x128xf32>
    %451 = arith.mulf %450, %449 : vector<8x128xf32>
    %cst_137 = arith.constant 5.000000e-01 : f32
    %452 = vector.broadcast %cst_137 : f32 to vector<8x128xf32>
    %453 = arith.addf %451, %452 : vector<8x128xf32>
    %454 = vector.extract_strided_slice %453 {offsets = [0, 0], sizes = [8, 64], strides = [1, 1]} : vector<8x128xf32> to vector<8x64xf32>
    %455 = vector.extract_strided_slice %453 {offsets = [0, 64], sizes = [8, 64], strides = [1, 1]} : vector<8x128xf32> to vector<8x64xf32>
    %456 = vector.extract_strided_slice %445 {offsets = [0, 128], sizes = [8, 64], strides = [1, 1]} : vector<8x256xf32> to vector<8x64xf32>
    %457 = math.tanh %456 : vector<8x64xf32>
    %458 = vector.extract_strided_slice %445 {offsets = [0, 192], sizes = [8, 64], strides = [1, 1]} : vector<8x256xf32> to vector<8x64xf32>
    %cst_138 = arith.constant 5.000000e-01 : f32
    %459 = vector.broadcast %cst_138 : f32 to vector<8x64xf32>
    %460 = arith.mulf %459, %458 : vector<8x64xf32>
    %461 = math.tanh %460 : vector<8x64xf32>
    %cst_139 = arith.constant 5.000000e-01 : f32
    %462 = vector.broadcast %cst_139 : f32 to vector<8x64xf32>
    %463 = arith.mulf %462, %461 : vector<8x64xf32>
    %cst_140 = arith.constant 5.000000e-01 : f32
    %464 = vector.broadcast %cst_140 : f32 to vector<8x64xf32>
    %465 = arith.addf %463, %464 : vector<8x64xf32>
    %466 = arith.mulf %455, %407 : vector<8x64xf32>
    %467 = arith.mulf %454, %457 : vector<8x64xf32>
    %468 = arith.addf %466, %467 : vector<8x64xf32>
    %469 = math.tanh %468 : vector<8x64xf32>
    %470 = arith.mulf %465, %469 : vector<8x64xf32>
    %471 = tpu.concatenate %470, %437 in 1 : vector<8x64xf32>, vector<8x64xf32> -> vector<8x128xf32>
    %cst_141 = arith.constant dense<0.000000e+00> : vector<8x256xf32>
    %472 = tpu.matmul %471, %8, %cst_141 {dimension_numbers = #tpu.dot_dimension_numbers<[1], [0], [0], [1], [0, 0, 1, 1], [], []>} : vector<8x128xf32>, vector<128x256xf32>, vector<8x256xf32> -> vector<8x256xf32>
    %473 = arith.addf %472, %11 : vector<8x256xf32>
    %474 = vector.extract_strided_slice %473 {offsets = [0, 0], sizes = [8, 128], strides = [1, 1]} : vector<8x256xf32> to vector<8x128xf32>
    %cst_142 = arith.constant 5.000000e-01 : f32
    %475 = vector.broadcast %cst_142 : f32 to vector<8x128xf32>
    %476 = arith.mulf %475, %474 : vector<8x128xf32>
    %477 = math.tanh %476 : vector<8x128xf32>
    %cst_143 = arith.constant 5.000000e-01 : f32
    %478 = vector.broadcast %cst_143 : f32 to vector<8x128xf32>
    %479 = arith.mulf %478, %477 : vector<8x128xf32>
    %cst_144 = arith.constant 5.000000e-01 : f32
    %480 = vector.broadcast %cst_144 : f32 to vector<8x128xf32>
    %481 = arith.addf %479, %480 : vector<8x128xf32>
    %482 = vector.extract_strided_slice %481 {offsets = [0, 0], sizes = [8, 64], strides = [1, 1]} : vector<8x128xf32> to vector<8x64xf32>
    %483 = vector.extract_strided_slice %481 {offsets = [0, 64], sizes = [8, 64], strides = [1, 1]} : vector<8x128xf32> to vector<8x64xf32>
    %484 = vector.extract_strided_slice %473 {offsets = [0, 128], sizes = [8, 64], strides = [1, 1]} : vector<8x256xf32> to vector<8x64xf32>
    %485 = math.tanh %484 : vector<8x64xf32>
    %486 = vector.extract_strided_slice %473 {offsets = [0, 192], sizes = [8, 64], strides = [1, 1]} : vector<8x256xf32> to vector<8x64xf32>
    %cst_145 = arith.constant 5.000000e-01 : f32
    %487 = vector.broadcast %cst_145 : f32 to vector<8x64xf32>
    %488 = arith.mulf %487, %486 : vector<8x64xf32>
    %489 = math.tanh %488 : vector<8x64xf32>
    %cst_146 = arith.constant 5.000000e-01 : f32
    %490 = vector.broadcast %cst_146 : f32 to vector<8x64xf32>
    %491 = arith.mulf %490, %489 : vector<8x64xf32>
    %cst_147 = arith.constant 5.000000e-01 : f32
    %492 = vector.broadcast %cst_147 : f32 to vector<8x64xf32>
    %493 = arith.addf %491, %492 : vector<8x64xf32>
    %494 = arith.mulf %483, %435 : vector<8x64xf32>
    %495 = arith.mulf %482, %485 : vector<8x64xf32>
    %496 = arith.addf %494, %495 : vector<8x64xf32>
    %497 = math.tanh %496 : vector<8x64xf32>
    %498 = arith.mulf %493, %497 : vector<8x64xf32>
    %499 = arith.index_cast %441 : i32 to index
    %c0_148 = arith.constant 0 : index
    %500 = vector.load %arg14[%499, %c0_148] : memref<64x64xf32, #tpu.memory_space<vmem>>, vector<8x64xf32>
    tpu.vector_store %arg14[%499, %c0_148], %498 {strides = array<i32>} : memref<64x64xf32, #tpu.memory_space<vmem>>, vector<8x64xf32>,
    %c8_i32_149 = arith.constant 8 : i32
    %c0_150 = arith.constant 0 : index
    %c0_151 = arith.constant 0 : index
    %501 = vector.load %arg14[%c0_150, %c0_151] : memref<64x64xf32, #tpu.memory_space<vmem>>, vector<64x64xf32>
    %c0_152 = arith.constant 0 : index
    %c0_153 = arith.constant 0 : index
    %502 = vector.load %arg6[%c0_152, %c0_153] : memref<64x60xf32, #tpu.memory_space<vmem>>, vector<64x60xf32>
    %cst_154 = arith.constant dense<0.000000e+00> : vector<64x60xf32>
    %503 = tpu.matmul %501, %502, %cst_154 {dimension_numbers = #tpu.dot_dimension_numbers<[1], [0], [0], [1], [0, 0, 1, 1], [], []>} : vector<64x64xf32>, vector<64x60xf32>, vector<64x60xf32> -> vector<64x60xf32>
    %c0_155 = arith.constant 0 : index
    %c0_156 = arith.constant 0 : index
    %504 = vector.load %arg7[%c0_155, %c0_156] : memref<1x60xf32, #tpu.memory_space<vmem>>, vector<1x60xf32>
    %505 = vector.broadcast %504 : vector<1x60xf32> to vector<64x60xf32>
    %506 = arith.addf %503, %505 : vector<64x60xf32>
    %cst_157 = arith.constant 0.000000e+00 : f32
    %507 = vector.broadcast %cst_157 : f32 to vector<64x60xf32>
    %508 = arith.cmpf ogt, %506, %507 : vector<64x60xf32>
    %cst_158 = arith.constant 0.00999999977 : f32
    %509 = vector.broadcast %cst_158 : f32 to vector<64x60xf32>
    %510 = arith.mulf %509, %506 : vector<64x60xf32>
    %511 = arith.select %508, %506, %510 : vector<64x60xi1>, vector<64x60xf32>
    %c0_159 = arith.constant 0 : index
    %c0_160 = arith.constant 0 : index
    %512 = vector.load %arg8[%c0_159, %c0_160] : memref<60x30xf32, #tpu.memory_space<vmem>>, vector<60x30xf32>
    %cst_161 = arith.constant dense<0.000000e+00> : vector<64x30xf32>
    %513 = tpu.matmul %511, %512, %cst_161 {dimension_numbers = #tpu.dot_dimension_numbers<[1], [0], [0], [1], [0, 0, 1, 1], [], []>} : vector<64x60xf32>, vector<60x30xf32>, vector<64x30xf32> -> vector<64x30xf32>
    %c0_162 = arith.constant 0 : index
    %c0_163 = arith.constant 0 : index
    %514 = vector.load %arg9[%c0_162, %c0_163] : memref<1x30xf32, #tpu.memory_space<vmem>>, vector<1x30xf32>
    %515 = vector.broadcast %514 : vector<1x30xf32> to vector<64x30xf32>
    %516 = arith.addf %513, %515 : vector<64x30xf32>
    %cst_164 = arith.constant 0.000000e+00 : f32
    %517 = vector.broadcast %cst_164 : f32 to vector<64x30xf32>
    %518 = arith.cmpf ogt, %516, %517 : vector<64x30xf32>
    %cst_165 = arith.constant 0.00999999977 : f32
    %519 = vector.broadcast %cst_165 : f32 to vector<64x30xf32>
    %520 = arith.mulf %519, %516 : vector<64x30xf32>
    %521 = arith.select %518, %516, %520 : vector<64x30xi1>, vector<64x30xf32>
    %c0_166 = arith.constant 0 : index
    %c0_167 = arith.constant 0 : index
    %522 = vector.load %arg10[%c0_166, %c0_167] : memref<30x128xf32, #tpu.memory_space<vmem>>, vector<30x128xf32>
    %cst_168 = arith.constant dense<0.000000e+00> : vector<64x128xf32>
    %523 = tpu.matmul %521, %522, %cst_168 {dimension_numbers = #tpu.dot_dimension_numbers<[1], [0], [0], [1], [0, 0, 1, 1], [], []>} : vector<64x30xf32>, vector<30x128xf32>, vector<64x128xf32> -> vector<64x128xf32>
    %c0_169 = arith.constant 0 : index
    %c0_170 = arith.constant 0 : index
    %524 = vector.load %arg11[%c0_169, %c0_170] : memref<1x128xf32, #tpu.memory_space<vmem>>, vector<1x128xf32>
    %525 = vector.broadcast %524 : vector<1x128xf32> to vector<64x128xf32>
    %526 = arith.addf %523, %525 : vector<64x128xf32>
    %c0_171 = arith.constant 0 : index
    %c0_172 = arith.constant 0 : index
    %527 = vector.load %arg12[%c0_171, %c0_172] : memref<64x128xf32, #tpu.memory_space<vmem>>, vector<64x128xf32>
    tpu.vector_store %arg12[%c0_171, %c0_172], %526 {strides = array<i32>} : memref<64x128xf32, #tpu.memory_space<vmem>>, vector<64x128xf32>,
    return
  }
}

</mosaic_0001>

<bundles_post_ra>
// kernel: tpu_custom_call.1
= control target key start
LH: loop header
LB: loop body
LE: loop exit
PB: predicated region body
PF: predicated region fallthrough
CT: control target
= control target key end

     0   :  { %17 = vsyncpa [#allocation5], 0  ;;  %s4137_s0 = inlined_call_operand.vmem [shape: f32[64,4], index: 0, kind: input, shape index: {}]   ;;  %s4138_s1 = inlined_call_operand.hbm [shape: f32[4,256], index: 1, kind: input, shape index: {}]   ;;  %s4139_s2 = inlined_call_operand.vmem [shape: f32[1,256], index: 2, kind: input, shape index: {}]   ;;  %s4140_s3 = inlined_call_operand.vmem [shape: f32[64,256], index: 3, kind: input, shape index: {}]   ;;  %s4141_s4 = inlined_call_operand.hbm [shape: f32[128,256], index: 4, kind: input, shape index: {}]   ;;  %s4142_s5 = inlined_call_operand.hbm [shape: f32[1,256], index: 5, kind: input, shape index: {}]   ;;  %s4143_s6 = inlined_call_operand.hbm [shape: f32[64,60], index: 6, kind: input, shape index: {}]   ;;  %s4144_s7 = inlined_call_operand.hbm [shape: f32[1,60], index: 7, kind: input, shape index: {}]   ;;  %s4145_s8 = inlined_call_operand.vmem [shape: f32[60,30], index: 8, kind: input, shape index: {}]   ;;  %s4146_s9 = inlined_call_operand.vmem [shape: f32[1,30], index: 9, kind: input, shape index: {}]   ;;  %s4147_s10 = inlined_call_operand.vmem [shape: f32[30,128], index: 10, kind: input, shape index: {}]   ;;  %s4148_s11 = inlined_call_operand.vmem [shape: f32[1,128], index: 11, kind: input, shape index: {}]   ;;  %s4149_s12 = inlined_call_operand.hbm [shape: f32[64,128], index: 12, kind: output, shape index: {}]  }
   0x1   :  { %18 = vsyncpa [#allocation8], 0 }
   0x2   :  { %19 = vsyncpa [#allocation11], 0 }
   0x3   :  { %20 = vsyncpa [#allocation6], 0  ;;  %s3367_s21 = smov [#allocation7]   ;;  %s3227_s25 = scalar_lea.hbm %s4141_s4, 4096 }
   0x4   :  { %s42_s22 = sshll.u32 %s3367_s21, 4  ;;  %p3228_p0 = scmp.ne.s32.totalorder %s4141_s4, %s3227_s25  ;;  %s43_s22 = int_to_ptr.vmem [resolvable:$true] %s42_s22 }
   0x5   :  { %p3231_p1 = scmp.lt.u32.totalorder %s3227_s25, %s4141_s4 }
   0x7   :  { %p3233_p2 = pnand %p3231_p1, %p3228_p0 }
   0x9   :  { %3236 = shalt.err (!%p3233_p2)
}
   0xa   :  { %s3237_s30 = scalar_lea.vmem %s43_s22, 4096  ;;  %p3242_p4 = scmp.lt.s32.totalorder %s43_s22, %s43_s22 }
   0xb   :  { %p3238_p3 = scmp.ne.s32.totalorder %s43_s22, %s3237_s30  ;;  %p3243_p5 = scmp.lt.s32.totalorder %s3237_s30, %s3237_s30 }
   0xd   :  { %p3244_p6 = por %p3243_p5, %p3242_p4 }
   0xf   :  { %p3245_p7 = pnand %p3244_p6, %p3238_p3 }
  0x11   :  { %3248 = shalt.err (!%p3245_p7)
}
  0x12   :  { %s3368_s13 = smov 256   ;;  %s3369_s14 = smov 16  }
  0x13   :  { %48 = dma.hbm_to_vmem [thread:$0]  %s4141_s4, 4096, %s43_s22, [#allocation8], %s3368_s13, %s3368_s13, %s3369_s14  }
  0x14   :  { %s3370_s17 = smov [#allocation10]   ;;  %s3249_s21 = scalar_lea.hbm %s4143_s6, 1024 }
  0x15   :  { %s64_s18 = sshll.u32 %s3370_s17, 4  ;;  %p3250_p8 = scmp.ne.s32.totalorder %s4143_s6, %s3249_s21  ;;  %s65_s18 = int_to_ptr.vmem [resolvable:$true] %s64_s18 }
  0x16   :  { %p3253_p9 = scmp.lt.u32.totalorder %s3249_s21, %s4143_s6 }
  0x18   :  { %p3255_p10 = pnand %p3253_p9, %p3250_p8 }
  0x1a   :  { %3258 = shalt.err (!%p3255_p10)
}
  0x1b   :  { %s3259_s27 = scalar_lea.vmem %s65_s18, 1024  ;;  %p3264_p12 = scmp.lt.s32.totalorder %s65_s18, %s65_s18 }
  0x1c   :  { %p3260_p11 = scmp.ne.s32.totalorder %s65_s18, %s3259_s27  ;;  %p3265_p13 = scmp.lt.s32.totalorder %s3259_s27, %s3259_s27 }
  0x1e   :  { %p3266_p0 = por %p3265_p13, %p3264_p12 }
  0x20   :  { %p3267_p1 = pnand %p3266_p0, %p3260_p11 }
  0x22   :  { %3270 = shalt.err (!%p3267_p1)
}
  0x23   :  { %s3371_s4 = smov 128   ;;  %s3372_s22 = smov 8  }
  0x24   :  { %70 = dma.hbm_to_vmem [thread:$0]  %s4143_s6, 1024, %s65_s18, [#allocation11], %s3371_s4, %s3371_s4, %s3372_s22  }
  0x25   :  { %s3373_s30 = smov [#allocation4]   ;;  %s3374_s14 = smov [#allocation9]  }
  0x26   :  { %s29_s13 = sshll.u32 %s3373_s30, 4  ;;  %s55_s15 = sshll.u32 %s3374_s14, 4  ;;  %s30_s13 = int_to_ptr.vmem [resolvable:$true] %s29_s13  ;;  %s56_s15 = int_to_ptr.vmem [resolvable:$true] %s55_s15 }
  0x27   :  { %s3271_s19 = scalar_lea.hbm %s4138_s1, 128 }
  0x28   :  { %p3272_p2 = scmp.ne.s32.totalorder %s4138_s1, %s3271_s19  ;;  %p3275_p3 = scmp.lt.u32.totalorder %s3271_s19, %s4138_s1 }
  0x2a   :  { %p3277_p4 = pnand %p3275_p3, %p3272_p2 }
  0x2c   :  { %3280 = shalt.err (!%p3277_p4)
}
  0x2d   :  { %s3281_s6 = scalar_lea.vmem %s30_s13, 128  ;;  %p3286_p6 = scmp.lt.s32.totalorder %s30_s13, %s30_s13 }
  0x2e   :  { %p3282_p5 = scmp.ne.s32.totalorder %s30_s13, %s3281_s6  ;;  %p3287_p7 = scmp.lt.s32.totalorder %s3281_s6, %s3281_s6 }
  0x30   :  { %p3288_p8 = por %p3287_p7, %p3286_p6 }
  0x32   :  { %p3289_p9 = pnand %p3288_p8, %p3282_p5 }
  0x34   :  { %3292 = shalt.err (!%p3289_p9)
}
  0x35   :  { %32 = dma.hbm_to_vmem [thread:$0]  %s4138_s1, 128, %s30_s13, [#allocation5]  }
  0x36   :  { %s3293_s28 = scalar_lea.hbm %s4142_s5, 32 }
  0x37   :  { %p3294_p10 = scmp.ne.s32.totalorder %s4142_s5, %s3293_s28  ;;  %p3297_p11 = scmp.lt.u32.totalorder %s3293_s28, %s4142_s5 }
  0x39   :  { %p3299_p12 = pnand %p3297_p11, %p3294_p10 }
  0x3b   :  { %3302 = shalt.err (!%p3299_p12)
}
  0x3c   :  { %s3303_s17 = scalar_lea.vmem %s56_s15, 32  ;;  %p3308_p0 = scmp.lt.s32.totalorder %s56_s15, %s56_s15 }
  0x3d   :  { %p3304_p13 = scmp.ne.s32.totalorder %s56_s15, %s3303_s17  ;;  %p3309_p1 = scmp.lt.s32.totalorder %s3303_s17, %s3303_s17 }
  0x3f   :  { %p3310_p2 = por %p3309_p1, %p3308_p0 }
  0x41   :  { %p3311_p3 = pnand %p3310_p2, %p3304_p13 }
  0x43   :  { %3314 = shalt.err (!%p3311_p3)
}
  0x44   :  { %58 = dma.hbm_to_vmem [thread:$0]  %s4142_s5, 32, %s56_s15, [#allocation8]  }
  0x45   :  { %s3375_s19 = smov [#allocation12]   ;;  %s3315_s24 = scalar_lea.hbm %s4144_s7, 16 }
  0x46   :  { %s77_s20 = sshll.u32 %s3375_s19, 4  ;;  %p3316_p4 = scmp.ne.s32.totalorder %s4144_s7, %s3315_s24  ;;  %s78_s20 = int_to_ptr.vmem [resolvable:$true] %s77_s20 }
  0x47   :  { %p3319_p5 = scmp.lt.u32.totalorder %s3315_s24, %s4144_s7 }
  0x49   :  { %p3321_p6 = pnand %p3319_p5, %p3316_p4 }
  0x4b   :  { %3324 = shalt.err (!%p3321_p6)
}
  0x4c   :  { %s3325_s27 = scalar_lea.vmem %s78_s20, 16  ;;  %s3329_s5 = scalar_lea.vmem %s78_s20, 32 }
  0x4d   :  { %p3326_p7 = scmp.ne.s32.totalorder %s78_s20, %s3325_s27  ;;  %p3330_p8 = scmp.lt.s32.totalorder %s78_s20, %s78_s20 }
  0x4e   :  { %p3331_p9 = scmp.lt.s32.totalorder %s3329_s5, %s3325_s27 }
  0x50   :  { %p3332_p10 = por %p3331_p9, %p3330_p8 }
  0x52   :  { %p3333_p11 = pnand %p3332_p10, %p3326_p7 }
  0x54   :  { %3336 = shalt.err (!%p3333_p11)
}
  0x55   :  { %80 = dma.hbm_to_vmem [thread:$0]  %s4144_s7, 16, %s78_s20, [#allocation11]  }
  0x56   :  { %3359 = dma.done.wait [#allocation5], 128  }
  0x57   :  { %3360 = vsyncadd [#allocation5], 4294967168 }
  0x58   :  { %3361 = dma.done.wait [#allocation8], 4128  }
  0x59   :  { %3362 = vsyncadd [#allocation8], 4294963168 }
  0x5a   :  { %3363 = dma.done.wait [#allocation11], 1040  }
  0x5b   :  { %3364 = vsyncadd [#allocation11], 4294966256  ;;  %v3376_v0 = vmov 0.0   ;;  %v112_v1 = vld [vmem:[#allocation4] sm:$0xff]  ;;  %vm152_vm0 = vcmask 1043456   ;;  %v287_v2 = vld [vmem:[%s4140_s3 + $0x8] sm:$0xff]  ;;  %v115_v35 = vlaneseq }
  0x5c   :  { %221 = vmatprep.mubr.f32.mxu0 %v3376_v0  ;;  %515 = vmatprep.mubr.f32.mxu1 %v3376_v0  ;;  %v126_v3 = vcombine.high %v112_v1, %v112_v1  ;;  %v289_v4 = vld [vmem:[%s4140_s3 + $0x18] sm:$0xff]  ;;  %v286_v5 = vld [vmem:[%s4140_s3] sm:$0xff]  ;;  %v288_v6 = vld [vmem:[%s4140_s3 + $0x10] sm:$0xff]  ;;  %vm127_vm1 = vcmask 31744   ;;  %vm351_vm2 = vcmask 523264   ;;  %vm3378_vm3 = vmmov 1  }
  0x5d   :  { %v104_v7 = vld [vmem:[%s4137_s0] sm:$0xff]  ;;  %v3525_v8 = vpack.c.bf16 %v289_v4, %v287_v2  ;;  %v3527_v9 = vpack.c.bf16 %v288_v6, %v286_v5  ;;  %v291_v10 = vld [vmem:[%s4140_s3 + $0x28] sm:$0xff]  ;;  %v293_v11 = vld [vmem:[%s4140_s3 + $0x38] sm:$0xff]  ;;  %v3635_v36 = vshrl.u32 %v115_v35, 7  ;;  %vm2122_vm7 = vcmask 490496   ;;  %s3379_s13 = smov [#allocation13]  }
  0x5e   :  { %2458 = vmatprep.subr.msk.mxu0 %vm152_vm0, %v126_v3  ;;  %v290_v12 = vld [vmem:[%s4140_s3 + $0x20] sm:$0xff]  ;;  %v292_v13 = vld [vmem:[%s4140_s3 + $0x30] sm:$0xff]  ;;  %v3543_v14 = vpack.c.bf16 %v293_v11, %v291_v10  ;;  %v295_v15 = vld [vmem:[%s4140_s3 + $0x48] sm:$0xff]  ;;  %vm2315_vm12 = vcmask 1045504  }
  0x5f   :  { %2459 = vmatpush1.msk.msra.mxu0 %vm152_vm0, %v112_v1  ;;  %v297_v16 = vld [vmem:[%s4140_s3 + $0x58] sm:$0xff]  ;;  %v105_v17 = vld [vmem:[%s4137_s0 + $0x8] sm:$0xff]  ;;  %v3558_v18 = vpack.c.bf16 %v292_v13, %v290_v12  ;;  %v294_v20 = vld [vmem:[%s4140_s3 + $0x40] sm:$0xff]  ;;  %v117_v37 = vsub.s32 0, %v3635_v36  ;;  %v121_v40 = vsub.s32 1, %v3635_v36 }
  0x60   :  { %2460 = vmatmul.mubr.msk.f32.vlgmr.msra.gmra.mrb[0].mxu0 %vm127_vm1, %v104_v7  ;;  %2626 = vmatprep.subr.bf16.mxu0 %v3525_v8  ;;  %v3561_v19 = vpack.c.bf16 %v297_v16, %v295_v15  ;;  %v296_v21 = vld [vmem:[%s4140_s3 + $0x50] sm:$0xff]  ;;  %v299_v22 = vld [vmem:[%s4140_s3 + $0x68] sm:$0xff]  ;;  %v301_v23 = vld [vmem:[%s4140_s3 + $0x78] sm:$0xff] }
  0x61   :  { %2628 = vmatpush1.bf16.msra.mxu0 %v3527_v9  ;;  %227 = vmatprep.mubr.f32.mxu0 %v3376_v0  ;;  %v106_v24 = vld [vmem:[%s4137_s0 + $0x10] sm:$0xff]  ;;  %v3581_v25 = vpack.c.bf16 %v296_v21, %v294_v20  ;;  %v3584_v26 = vpack.c.bf16 %v301_v23, %v299_v22  ;;  %v298_v27 = vld [vmem:[%s4140_s3 + $0x60] sm:$0xff]  ;;  %v107_v29 = vld [vmem:[%s4137_s0 + $0x18] sm:$0xff] }
  0x62   :  { %2630 = vmatprep.subr.bf16.mxu0 %v3543_v14  ;;  %v300_v28 = vld [vmem:[%s4140_s3 + $0x70] sm:$0xff]  ;;  %v108_v31 = vld [vmem:[%s4137_s0 + $0x20] sm:$0xff]  ;;  %v109_v32 = vld [vmem:[%s4137_s0 + $0x28] sm:$0xff] }
  0x63   :  { %v3598_v30 = vpack.c.bf16 %v300_v28, %v298_v27  ;;  %v110_v33 = vld [vmem:[%s4137_s0 + $0x30] sm:$0xff]  ;;  %v111_v34 = vld [vmem:[%s4137_s0 + $0x38] sm:$0xff]  ;;  %v113_v38 = vld [vmem:[%s4139_s2] sm:$0x3]  ;;  %s3377_s2 = smov 64  }
  0x64   :  { %2461 = vmatmul.mubr.msk.f32.gmra.mrb[2].mxu0 %vm127_vm1, %v105_v17  ;;  %v3643_v39 = vrot.slane %v113_v38, %v117_v37  ;;  %v3649_v43 = vrot.slane %v113_v38, %v121_v40  ;;  %v303_v52 = vld [vmem:[#allocation7 + $0x8] sm:$0xff]  ;;  %v305_v53 = vld [vmem:[#allocation7 + $0x18] sm:$0xff]  ;;  %v302_v54 = vld [vmem:[#allocation7] sm:$0xff] }
  0x65   :  { %233 = vmatprep.mubr.f32.mxu0 %v3376_v0  ;;  %2632 = vmatpush1.bf16.msra.mxu0 %v3558_v18  ;;  %v3659_v55 = vpack.c.bf16 %v305_v53, %v303_v52  ;;  %v304_v56 = vld [vmem:[#allocation7 + $0x10] sm:$0xff]  ;;  %v307_v57 = vld [vmem:[#allocation7 + $0x28] sm:$0xff]  ;;  %v309_v58 = vld [vmem:[#allocation7 + $0x38] sm:$0xff] }
  0x66   :  { %2634 = vmatprep.subr.bf16.mxu0 %v3561_v19  ;;  %v3661_v59 = vpack.c.bf16 %v304_v56, %v302_v54  ;;  %v3663_v60 = vpack.c.bf16 %v309_v58, %v307_v57  ;;  %v306_v61 = vld [vmem:[#allocation7 + $0x20] sm:$0xff]  ;;  %v308_v62 = vld [vmem:[#allocation7 + $0x30] sm:$0xff]  ;;  %v311_v63 = vld [vmem:[#allocation7 + $0x48] sm:$0xff] }
  0x67   :  { %2642 = vmatprep.subr.bf16.mxu1 %v3659_v55  ;;  %v313_v1 = vld [vmem:[#allocation7 + $0x58] sm:$0xff]  ;;  %v3667_v2 = vpack.c.bf16 %v308_v62, %v306_v61  ;;  %v310_v4 = vld [vmem:[#allocation7 + $0x40] sm:$0xff]  ;;  %v312_v5 = vld [vmem:[#allocation7 + $0x50] sm:$0xff] }
  0x68   :  { %2462 = vmatmul.mubr.msk.f32.gmra.mrb[4].mxu0 %vm127_vm1, %v106_v24  ;;  %2644 = vmatpush1.bf16.msra.mxu1 %v3661_v59  ;;  %v3670_v3 = vpack.c.bf16 %v313_v1, %v311_v63  ;;  %v315_v6 = vld [vmem:[#allocation7 + $0x68] sm:$0xff]  ;;  %v317_v7 = vld [vmem:[#allocation7 + $0x78] sm:$0xff]  ;;  %v3673_v10 = vpack.c.bf16 %v312_v5, %v310_v4  ;;  %v314_v12 = vld [vmem:[#allocation7 + $0x60] sm:$0xff] }
  0x69   :  { %239 = vmatprep.mubr.f32.mxu0 %v3376_v0  ;;  %2636 = vmatpush1.bf16.msra.mxu0 %v3581_v25  ;;  %v3676_v11 = vpack.c.bf16 %v317_v7, %v315_v6  ;;  %v316_v13 = vld [vmem:[#allocation7 + $0x70] sm:$0xff]  ;;  %v319_v15 = vld [vmem:[#allocation7 + $0x88] sm:$0xff]  ;;  %v321_v16 = vld [vmem:[#allocation7 + $0x98] sm:$0xff] }
  0x6a   :  { %2638 = vmatprep.subr.bf16.mxu0 %v3584_v26  ;;  %2646 = vmatprep.subr.bf16.mxu1 %v3663_v60  ;;  %v3679_v17 = vpack.c.bf16 %v316_v13, %v314_v12  ;;  %v3682_v20 = vpack.c.bf16 %v321_v16, %v319_v15  ;;  %v318_v21 = vld [vmem:[#allocation7 + $0x80] sm:$0xff]  ;;  %v320_v22 = vld [vmem:[#allocation7 + $0x90] sm:$0xff]  ;;  %v323_v23 = vld [vmem:[#allocation7 + $0xa8] sm:$0xff] }
  0x6b   :  { %v325_v24 = vld [vmem:[#allocation7 + $0xb8] sm:$0xff]  ;;  %v3685_v27 = vpack.c.bf16 %v320_v22, %v318_v21  ;;  %v326_v38 = vld [vmem:[#allocation7 + $0xc0] sm:$0xff]  ;;  %vm3038_vm4 = vmpackc.low %vm152_vm0, %vm3378_vm3 }
  0x6c   :  { %2463 = vmatmul.mubr.msk.f32.gmra.mrb[6].mxu0 %vm127_vm1, %v107_v29  ;;  %2648 = vmatpush1.bf16.msra.mxu1 %v3667_v2  ;;  %v3688_v28 = vpack.c.bf16 %v325_v24, %v323_v23  ;;  %v322_v29 = vld [vmem:[#allocation7 + $0xa0] sm:$0xff]  ;;  %vm3048_vm13 = vmpackc.low %vm2315_vm12, %vm3378_vm3 }
  0x6d   :  { %245 = vmatprep.mubr.f32.mxu0 %v3376_v0  ;;  %2640 = vmatpush1.bf16.msra.mxu0 %v3598_v30 }
  0x6e   :  { %2674 = vmatprep.subr.bf16.mxu0 %v3525_v8  ;;  %2650 = vmatprep.subr.bf16.mxu1 %v3670_v3 }
  0x70   :  { %2464 = vmatmul.mubr.msk.f32.gmra.mrb[8].mxu0 %vm127_vm1, %v108_v31  ;;  %2652 = vmatpush1.bf16.msra.mxu1 %v3673_v10  ;;  %v324_v31 = vld [vmem:[#allocation7 + $0xb0] sm:$0xff] }
  0x71   :  { %251 = vmatprep.mubr.f32.mxu0 %v3376_v0  ;;  %2654 = vmatprep.subr.bf16.mxu1 %v3676_v11 }
  0x74   :  { %2465 = vmatmul.mubr.msk.f32.gmra.mrb[10].mxu0 %vm127_vm1, %v109_v32  ;;  %2656 = vmatpush1.bf16.msra.mxu1 %v3679_v17  ;;  %v327_v32 = vld [vmem:[#allocation7 + $0xc8] sm:$0xff] }
  0x75   :  { %257 = vmatprep.mubr.f32.mxu0 %v3376_v0  ;;  %2658 = vmatprep.subr.bf16.mxu1 %v3682_v20 }
  0x78   :  { %2466 = vmatmul.mubr.msk.f32.gmra.mrb[12].mxu0 %vm127_vm1, %v110_v33  ;;  %v329_v33 = vld [vmem:[#allocation7 + $0xd8] sm:$0xff]  ;;  %2660 = vmatpush1.bf16.msra.mxu1 %v3685_v27 }
  0x79   :  { %263 = vmatprep.mubr.f32.mxu0 %v3376_v0  ;;  %2662 = vmatprep.subr.bf16.mxu1 %v3688_v28  ;;  %v3694_v35 = vpack.c.bf16 %v329_v33, %v327_v32 }
  0x7c   :  { %2467 = vmatmul.mubr.msk.f32.gmra.mrb[14].mxu0 %vm127_vm1, %v111_v34  ;;  %v3691_v34 = vpack.c.bf16 %v324_v31, %v322_v29 }
  0x7d   :  { %419 = vmatprep.mubr.f32.mxu0 %v3376_v0 }
  0x7e   :  { %2664 = vmatpush1.bf16.msra.mxu1 %v3691_v34 }
  0x7f   :  { %2666 = vmatprep.subr.bf16.mxu1 %v3694_v35 }
  0x80   :  { %420 = vmatmul.mubr.f32.vlgmr.msra.gmra.mrb[0].mxu0 %v3376_v0 }
  0x81   :  { %2676 = vmatpush1.bf16.msra.mxu0 %v3527_v9  ;;  %616 = vmatprep.mubr.f32.mxu0 %v3376_v0 }
  0x82   :  { %2678 = vmatprep.subr.bf16.mxu0 %v3543_v14 }
  0x85   :  { %2680 = vmatpush1.bf16.msra.mxu0 %v3558_v18 }
  0x86   :  { %2682 = vmatprep.subr.bf16.mxu0 %v3561_v19 }
  0x89   :  { %2684 = vmatpush1.bf16.msra.mxu0 %v3581_v25 }
  0x8a   :  { %2686 = vmatprep.subr.bf16.mxu0 %v3584_v26 }
  0x8d   :  { %2688 = vmatpush1.bf16.msra.mxu0 %v3598_v30 }
  0x8e   :  { %2722 = vmatprep.subr.bf16.mxu0 %v3525_v8 }
 0x153   :  { %v421_v41 = vpop.f32.mrb[0].mxu0 }
 0x154   :  { %v3053_v42 = vadd.f32 %v421_v41, %v3643_v39  ;;  %v423_v44 = vpop.f32.mrb[1].mxu0  ;;  %v328_v41 = vld [vmem:[#allocation7 + $0xd0] sm:$0xff] }
 0x155   :  { %v3652_v46 = vadd.f32 %v423_v44, %v3649_v43  ;;  %v333_v44 = vld [vmem:[#allocation7 + $0xf8] sm:$0xff] }
 0x156   :  { %v428_v45 = vmul.f32 0.5, %v3053_v42  ;;  %v331_v42 = vld [vmem:[#allocation7 + $0xe8] sm:$0xff] }
 0x157   :  { %v433_v52 = vmul.f32 0.5, %v3652_v46 }
 0x158   :  { %3099 = vtanh.f32 %v428_v45  ;;  %v3697_v45 = vpack.c.bf16 %v328_v41, %v326_v38 }
 0x159   :  { %3101 = vtanh.f32 %v3652_v46  ;;  %v334_v46 = vld [vmem:[#allocation9] sm:$0x3] }
 0x15a   :  { %2668 = vmatpush1.bf16.msra.mxu1 %v3697_v45  ;;  %3103 = vtanh.f32 %v433_v52  ;;  %v3750_v12 = vrot.slane %v334_v46, %v121_v40 }
 0x162   :  { %v3100_v47 = vpop.eup %3099 }
 0x163   :  { %v430_v48 = vmul.f32 0.5, %v3100_v47  ;;  %v3102_v50 = vpop.eup %3101  ;;  %v3700_v47 = vpack.c.bf16 %v333_v44, %v331_v42 }
 0x164   :  { %v3104_v57 = vpop.eup %3103 }
 0x165   :  { %v3655_v49 = vadd.f32 0.5, %v430_v48  ;;  %v330_v48 = vld [vmem:[#allocation7 + $0xe0] sm:$0xff]  ;;  %2670 = vmatprep.subr.bf16.mxu1 %v3700_v47  ;;  %v435_v58 = vmul.f32 0.5, %v3104_v57 }
 0x167   :  { %v438_v51 = vmul.f32 %v3102_v50, %v3655_v49  ;;  %v332_v50 = vld [vmem:[#allocation7 + $0xf0] sm:$0xff]  ;;  %v437_v53 = vmul.f32 0.0, %v3655_v49  ;;  %v436_v61 = vadd.f32 0.5, %v435_v58  ;;  %v3744_v49 = vrot.slane %v334_v46, %v117_v37 }
 0x169   :  { %440 = vrot.lane.b32.xlu0 %v438_v51, %s3377_s2  ;;  %v3703_v51 = vpack.c.bf16 %v332_v50, %v330_v48 }
 0x16b   :  { %2672 = vmatpush1.bf16.msra.mxu1 %v3703_v51 }
 0x16c   :  { %2690 = vmatprep.subr.bf16.mxu1 %v3659_v55 }
 0x1db   :  { %v441_v54 = vpop.permute.xlu0 %440 }
 0x1dc   :  { %v3710_v56 = vadd.f32 %v441_v54, %v437_v53 }
 0x1de   :  { %3105 = vtanh.f32 %v3710_v56 }
 0x1e8   :  { %v3106_v62 = vpop.eup %3105 }
 0x1e9   :  { %v445_v63 = vmul.f32 %v3106_v62, %v436_v61 }
 0x1eb   :  { %447 = vrot.lane.b32.xlu0 %v445_v63, %s3377_s2 }
 0x25d   :  { %v448_v1 = vpop.permute.xlu0 %447 }
 0x25e   :  { %2468 = vmatmul.mubr.msk.f32.vlgmr.msra.gmra.mrb[0].mxu1 %vm351_vm2, %v448_v1  ;;  %2469 = vmatmul.mubr.msk.f32.vlgmr.msra.gmra.mrb[2].mxu0 %vm351_vm2, %v448_v1 }
 0x25f   :  { %2692 = vmatpush1.bf16.msra.mxu1 %v3661_v59  ;;  %2724 = vmatpush1.bf16.msra.mxu0 %v3527_v9 }
 0x260   :  { %2694 = vmatprep.subr.bf16.mxu1 %v3663_v60  ;;  %2726 = vmatprep.subr.bf16.mxu0 %v3543_v14 }
 0x261   :  { %814 = vmatprep.mubr.f32.mxu0 %v3376_v0  ;;  %712 = vmatprep.mubr.f32.mxu1 %v3376_v0 }
 0x263   :  { %2696 = vmatpush1.bf16.msra.mxu1 %v3667_v2  ;;  %2728 = vmatpush1.bf16.msra.mxu0 %v3558_v18 }
 0x264   :  { %2698 = vmatprep.subr.bf16.mxu1 %v3670_v3  ;;  %2730 = vmatprep.subr.bf16.mxu0 %v3561_v19 }
 0x267   :  { %2700 = vmatpush1.bf16.msra.mxu1 %v3673_v10  ;;  %2732 = vmatpush1.bf16.msra.mxu0 %v3581_v25 }
 0x268   :  { %2702 = vmatprep.subr.bf16.mxu1 %v3676_v11  ;;  %2734 = vmatprep.subr.bf16.mxu0 %v3584_v26 }
 0x26b   :  { %2704 = vmatpush1.bf16.msra.mxu1 %v3679_v17  ;;  %2736 = vmatpush1.bf16.msra.mxu0 %v3598_v30 }
 0x26c   :  { %2706 = vmatprep.subr.bf16.mxu1 %v3682_v20  ;;  %2770 = vmatprep.subr.bf16.mxu0 %v3525_v8 }
 0x26f   :  { %2708 = vmatpush1.bf16.msra.mxu1 %v3685_v27 }
 0x270   :  { %2710 = vmatprep.subr.bf16.mxu1 %v3688_v28 }
 0x273   :  { %2712 = vmatpush1.bf16.msra.mxu1 %v3691_v34 }
 0x274   :  { %2714 = vmatprep.subr.bf16.mxu1 %v3694_v35 }
 0x277   :  { %2716 = vmatpush1.bf16.msra.mxu1 %v3697_v45 }
 0x278   :  { %2718 = vmatprep.subr.bf16.mxu1 %v3700_v47 }
 0x27b   :  { %2720 = vmatpush1.bf16.msra.mxu1 %v3703_v51 }
 0x27c   :  { %2738 = vmatprep.subr.bf16.mxu1 %v3659_v55 }
 0x331   :  { %v517_v4 = vpop.f32.mrb[0].mxu1  ;;  %v618_v5 = vpop.f32.mrb[2].mxu0 }
 0x332   :  { %v518_v6 = vadd.f32 %v517_v4, %v3744_v49  ;;  %v3055_v7 = vadd.f32 %v618_v5, %v3643_v39  ;;  %v519_v13 = vpop.f32.mrb[1].mxu1  ;;  %v620_v15 = vpop.f32.mrb[3].mxu0 }
 0x333   :  { %v520_v22 = vadd.f32 %v519_v13, %v3750_v12  ;;  %v3056_v37 = vadd.f32 %v620_v15, %v3649_v43 }
 0x334   :  { %v522_v16 = vmul.f32 0.5, %v518_v6  ;;  %v625_v21 = vmul.f32 0.5, %v3055_v7 }
 0x335   :  { %v630_v42 = vmul.f32 0.5, %v3056_v37  ;;  %v527_v61 = vmul.f32 0.5, %v520_v22 }
 0x336   :  { %3107 = vtanh.f32 %v522_v16 }
 0x337   :  { %3109 = vtanh.f32 %v625_v21 }
 0x338   :  { %3111 = vtanh.f32 %v520_v22 }
 0x339   :  { %3113 = vtanh.f32 %v3056_v37 }
 0x33a   :  { %3115 = vtanh.f32 %v630_v42 }
 0x340   :  { %v3108_v23 = vpop.eup %3107 }
 0x341   :  { %v3110_v24 = vpop.eup %3109  ;;  %v524_v29 = vmul.f32 0.5, %v3108_v23 }
 0x342   :  { %v627_v31 = vmul.f32 0.5, %v3110_v24  ;;  %v3112_v36 = vpop.eup %3111 }
 0x343   :  { %v525_v32 = vadd.f32 0.5, %v524_v29  ;;  %v3114_v33 = vpop.eup %3113 }
 0x344   :  { %v628_v40 = vadd.f32 0.5, %v627_v31  ;;  %v3116_v52 = vpop.eup %3115 }
 0x345   :  { %v532_v38 = vmul.f32 %v3112_v36, %v525_v32  ;;  %v632_v53 = vmul.f32 0.5, %v3116_v52  ;;  %v531_v63 = vmul.f32 0.0, %v525_v32 }
 0x346   :  { %v635_v41 = vmul.f32 %v3114_v33, %v628_v40  ;;  %v634_v44 = vmul.f32 %v628_v40, %v3710_v56 }
 0x347   :  { %534 = vrot.lane.b32.xlu0 %v532_v38, %s3377_s2  ;;  %v633_v54 = vadd.f32 0.5, %v632_v53 }
 0x348   :  { %637 = vrot.lane.b32.xlu1 %v635_v41, %s3377_s2 }
 0x3b9   :  { %v535_v62 = vpop.permute.xlu0 %534 }
 0x3ba   :  { %v638_v48 = vpop.permute.xlu1 %637  ;;  %v3761_v1 = vadd.f32 %v535_v62, %v531_v63 }
 0x3bb   :  { %v3757_v50 = vadd.f32 %v638_v48, %v634_v44 }
 0x3bd   :  { %3117 = vtanh.f32 %v3757_v50 }
 0x3be   :  { %3119 = vtanh.f32 %v527_v61 }
 0x3bf   :  { %3121 = vtanh.f32 %v3761_v1 }
 0x3c7   :  { %v3118_v57 = vpop.eup %3117 }
 0x3c8   :  { %v642_v58 = vmul.f32 %v3118_v57, %v633_v54  ;;  %v3120_v56 = vpop.eup %3119 }
 0x3c9   :  { %v529_v46 = vmul.f32 0.5, %v3120_v56  ;;  %v3122_v4 = vpop.eup %3121 }
 0x3ca   :  { %644 = vrot.lane.b32.xlu1 %v642_v58, %s3377_s2 }
 0x3cb   :  { %v530_v5 = vadd.f32 0.5, %v529_v46 }
 0x3cd   :  { %v3764_v6 = vmul.f32 %v3122_v4, %v530_v5 }
 0x43c   :  { %v645_v7 = vpop.permute.xlu1 %644 }
 0x43d   :  { %v647_v13 = vsel %vm351_vm2, %v645_v7, %v3764_v6  ;;  %2470 = vmatmul.mubr.msk.f32.vlgmr.msra.gmra.mrb[4].mxu0 %vm351_vm2, %v645_v7 }
 0x43e   :  { %713 = vmatmul.mubr.f32.vlgmr.msra.gmra.mrb[2].mxu1 %v647_v13  ;;  %2772 = vmatpush1.bf16.msra.mxu0 %v3527_v9 }
 0x43f   :  { %2740 = vmatpush1.bf16.msra.mxu1 %v3661_v59  ;;  %2774 = vmatprep.subr.bf16.mxu0 %v3543_v14 }
 0x440   :  { %2742 = vmatprep.subr.bf16.mxu1 %v3663_v60  ;;  %1012 = vmatprep.mubr.f32.mxu0 %v3376_v0 }
 0x441   :  { %910 = vmatprep.mubr.f32.mxu1 %v3376_v0 }
 0x442   :  { %2776 = vmatpush1.bf16.msra.mxu0 %v3558_v18 }
 0x443   :  { %2744 = vmatpush1.bf16.msra.mxu1 %v3667_v2  ;;  %2778 = vmatprep.subr.bf16.mxu0 %v3561_v19 }
 0x444   :  { %2746 = vmatprep.subr.bf16.mxu1 %v3670_v3 }
 0x446   :  { %2780 = vmatpush1.bf16.msra.mxu0 %v3581_v25 }
 0x447   :  { %2748 = vmatpush1.bf16.msra.mxu1 %v3673_v10  ;;  %2782 = vmatprep.subr.bf16.mxu0 %v3584_v26 }
 0x448   :  { %2750 = vmatprep.subr.bf16.mxu1 %v3676_v11 }
 0x44a   :  { %2784 = vmatpush1.bf16.msra.mxu0 %v3598_v30 }
 0x44b   :  { %2752 = vmatpush1.bf16.msra.mxu1 %v3679_v17  ;;  %2786 = vmatprep.subr.bf16.mxu0 %v3659_v55 }
 0x44c   :  { %2754 = vmatprep.subr.bf16.mxu1 %v3682_v20 }
 0x44f   :  { %2756 = vmatpush1.bf16.msra.mxu1 %v3685_v27 }
 0x450   :  { %2758 = vmatprep.subr.bf16.mxu1 %v3688_v28 }
 0x453   :  { %2760 = vmatpush1.bf16.msra.mxu1 %v3691_v34 }
 0x454   :  { %2762 = vmatprep.subr.bf16.mxu1 %v3694_v35 }
 0x457   :  { %2764 = vmatpush1.bf16.msra.mxu1 %v3697_v45 }
 0x458   :  { %2766 = vmatprep.subr.bf16.mxu1 %v3700_v47 }
 0x45b   :  { %2768 = vmatpush1.bf16.msra.mxu1 %v3703_v51 }
 0x45c   :  { %2834 = vmatprep.subr.bf16.mxu1 %v3659_v55 }
 0x510   :  { %v816_v15 = vpop.f32.mrb[4].mxu0 }
 0x511   :  { %v3057_v16 = vadd.f32 %v816_v15, %v3643_v39  ;;  %v714_v21 = vpop.f32.mrb[2].mxu1  ;;  %v818_v22 = vpop.f32.mrb[5].mxu0 }
 0x512   :  { %v715_v37 = vadd.f32 %v714_v21, %v3744_v49  ;;  %v716_v23 = vpop.f32.mrb[3].mxu1  ;;  %v3058_v31 = vadd.f32 %v818_v22, %v3649_v43 }
 0x513   :  { %v823_v24 = vmul.f32 0.5, %v3057_v16  ;;  %v717_v32 = vadd.f32 %v716_v23, %v3750_v12 }
 0x514   :  { %v719_v29 = vmul.f32 0.5, %v715_v37  ;;  %v828_v54 = vmul.f32 0.5, %v3058_v31 }
 0x515   :  { %3123 = vtanh.f32 %v823_v24  ;;  %v724_v5 = vmul.f32 0.5, %v717_v32 }
 0x516   :  { %3125 = vtanh.f32 %v719_v29 }
 0x517   :  { %3127 = vtanh.f32 %v3058_v31 }
 0x518   :  { %3129 = vtanh.f32 %v717_v32 }
 0x519   :  { %3131 = vtanh.f32 %v828_v54 }
 0x51f   :  { %v3124_v36 = vpop.eup %3123 }
 0x520   :  { %v3126_v40 = vpop.eup %3125  ;;  %v825_v33 = vmul.f32 0.5, %v3124_v36 }
 0x521   :  { %v721_v38 = vmul.f32 0.5, %v3126_v40  ;;  %v3128_v42 = vpop.eup %3127 }
 0x522   :  { %v826_v41 = vadd.f32 0.5, %v825_v33  ;;  %v3130_v48 = vpop.eup %3129 }
 0x523   :  { %v722_v44 = vadd.f32 0.5, %v721_v38  ;;  %v3132_v62 = vpop.eup %3131 }
 0x524   :  { %v833_v52 = vmul.f32 %v3128_v42, %v826_v41  ;;  %v832_v57 = vmul.f32 %v826_v41, %v3757_v50  ;;  %v830_v63 = vmul.f32 0.5, %v3132_v62 }
 0x525   :  { %v729_v53 = vmul.f32 %v3130_v48, %v722_v44  ;;  %v728_v13 = vmul.f32 %v722_v44, %v3761_v1 }
 0x526   :  { %835 = vrot.lane.b32.xlu1 %v833_v52, %s3377_s2  ;;  %v831_v56 = vadd.f32 0.5, %v830_v63 }
 0x52a   :  { %731 = vrot.lane.b32.xlu1 %v729_v53, %s3377_s2 }
 0x598   :  { %v836_v58 = vpop.permute.xlu1 %835 }
 0x599   :  { %v3802_v61 = vadd.f32 %v836_v58, %v832_v57 }
 0x59b   :  { %3133 = vtanh.f32 %v3802_v61 }
 0x59c   :  { %v732_v7 = vpop.permute.xlu1 %731  ;;  %3135 = vtanh.f32 %v724_v5 }
 0x59d   :  { %v3807_v15 = vadd.f32 %v732_v7, %v728_v13 }
 0x59f   :  { %3137 = vtanh.f32 %v3807_v15 }
 0x5a5   :  { %v3134_v46 = vpop.eup %3133 }
 0x5a6   :  { %v840_v4 = vmul.f32 %v3134_v46, %v831_v56  ;;  %v3136_v50 = vpop.eup %3135 }
 0x5a7   :  { %v726_v16 = vmul.f32 0.5, %v3136_v50 }
 0x5a8   :  { %842 = vrot.lane.b32.xlu0 %v840_v4, %s3377_s2 }
 0x5a9   :  { %v3138_v21 = vpop.eup %3137  ;;  %v727_v22 = vadd.f32 0.5, %v726_v16 }
 0x5ab   :  { %v3810_v37 = vmul.f32 %v3138_v21, %v727_v22 }
 0x61a   :  { %v843_v23 = vpop.permute.xlu0 %842 }
 0x61b   :  { %v845_v24 = vsel %vm351_vm2, %v843_v23, %v3810_v37  ;;  %2471 = vmatmul.mubr.msk.f32.vlgmr.msra.gmra.mrb[6].mxu0 %vm351_vm2, %v843_v23 }
 0x61c   :  { %911 = vmatmul.mubr.f32.vlgmr.msra.gmra.mrb[4].mxu1 %v845_v24  ;;  %2788 = vmatpush1.bf16.msra.mxu0 %v3661_v59 }
 0x61d   :  { %2790 = vmatprep.subr.bf16.mxu0 %v3663_v60  ;;  %1108 = vmatprep.mubr.f32.mxu0 %v3376_v0 }
 0x61e   :  { %2836 = vmatpush1.bf16.msra.mxu1 %v3661_v59  ;;  %1306 = vmatprep.mubr.f32.mxu1 %v3376_v0 }
 0x61f   :  { %2838 = vmatprep.subr.bf16.mxu1 %v3663_v60 }
 0x620   :  { %2792 = vmatpush1.bf16.msra.mxu0 %v3667_v2 }
 0x621   :  { %2794 = vmatprep.subr.bf16.mxu0 %v3670_v3 }
 0x622   :  { %2840 = vmatpush1.bf16.msra.mxu1 %v3667_v2 }
 0x623   :  { %2842 = vmatprep.subr.bf16.mxu1 %v3670_v3 }
 0x624   :  { %2796 = vmatpush1.bf16.msra.mxu0 %v3673_v10 }
 0x625   :  { %2798 = vmatprep.subr.bf16.mxu0 %v3676_v11 }
 0x626   :  { %2844 = vmatpush1.bf16.msra.mxu1 %v3673_v10 }
 0x627   :  { %2846 = vmatprep.subr.bf16.mxu1 %v3676_v11 }
 0x628   :  { %2800 = vmatpush1.bf16.msra.mxu0 %v3679_v17 }
 0x629   :  { %2802 = vmatprep.subr.bf16.mxu0 %v3682_v20 }
 0x62a   :  { %2848 = vmatpush1.bf16.msra.mxu1 %v3679_v17 }
 0x62b   :  { %2850 = vmatprep.subr.bf16.mxu1 %v3682_v20 }
 0x62c   :  { %2804 = vmatpush1.bf16.msra.mxu0 %v3685_v27 }
 0x62d   :  { %2806 = vmatprep.subr.bf16.mxu0 %v3688_v28 }
 0x62e   :  { %2852 = vmatpush1.bf16.msra.mxu1 %v3685_v27 }
 0x62f   :  { %2854 = vmatprep.subr.bf16.mxu1 %v3688_v28 }
 0x630   :  { %2808 = vmatpush1.bf16.msra.mxu0 %v3691_v34 }
 0x631   :  { %2810 = vmatprep.subr.bf16.mxu0 %v3694_v35 }
 0x632   :  { %2856 = vmatpush1.bf16.msra.mxu1 %v3691_v34 }
 0x633   :  { %2858 = vmatprep.subr.bf16.mxu1 %v3694_v35 }
 0x634   :  { %2812 = vmatpush1.bf16.msra.mxu0 %v3697_v45 }
 0x635   :  { %2814 = vmatprep.subr.bf16.mxu0 %v3700_v47 }
 0x636   :  { %2860 = vmatpush1.bf16.msra.mxu1 %v3697_v45 }
 0x637   :  { %2862 = vmatprep.subr.bf16.mxu1 %v3700_v47 }
 0x638   :  { %2816 = vmatpush1.bf16.msra.mxu0 %v3703_v51 }
 0x639   :  { %2818 = vmatprep.subr.bf16.mxu0 %v3525_v8 }
 0x63a   :  { %2864 = vmatpush1.bf16.msra.mxu1 %v3703_v51 }
 0x63b   :  { %2882 = vmatprep.subr.bf16.mxu1 %v3659_v55 }
 0x6ee   :  { %v1014_v1 = vpop.f32.mrb[6].mxu0 }
 0x6ef   :  { %v3059_v29 = vadd.f32 %v1014_v1, %v3643_v39  ;;  %v912_v31 = vpop.f32.mrb[4].mxu1  ;;  %v1016_v32 = vpop.f32.mrb[7].mxu0 }
 0x6f0   :  { %v913_v36 = vadd.f32 %v912_v31, %v3744_v49  ;;  %v914_v40 = vpop.f32.mrb[5].mxu1  ;;  %v3060_v41 = vadd.f32 %v1016_v32, %v3649_v43 }
 0x6f1   :  { %v1021_v33 = vmul.f32 0.5, %v3059_v29  ;;  %v915_v42 = vadd.f32 %v914_v40, %v3750_v12 }
 0x6f2   :  { %v917_v38 = vmul.f32 0.5, %v913_v36  ;;  %v1026_v46 = vmul.f32 0.5, %v3060_v41 }
 0x6f3   :  { %3139 = vtanh.f32 %v1021_v33  ;;  %v922_v23 = vmul.f32 0.5, %v915_v42 }
 0x6f4   :  { %3141 = vtanh.f32 %v917_v38 }
 0x6f5   :  { %3143 = vtanh.f32 %v3060_v41 }
 0x6f6   :  { %3145 = vtanh.f32 %v915_v42 }
 0x6f7   :  { %3147 = vtanh.f32 %v1026_v46 }
 0x6fd   :  { %v3140_v44 = vpop.eup %3139 }
 0x6fe   :  { %v3142_v48 = vpop.eup %3141  ;;  %v1023_v52 = vmul.f32 0.5, %v3140_v44 }
 0x6ff   :  { %v919_v53 = vmul.f32 0.5, %v3142_v48  ;;  %v3144_v57 = vpop.eup %3143 }
 0x700   :  { %v1024_v54 = vadd.f32 0.5, %v1023_v52  ;;  %v3146_v62 = vpop.eup %3145 }
 0x701   :  { %v920_v58 = vadd.f32 0.5, %v919_v53  ;;  %v3148_v13 = vpop.eup %3147 }
 0x702   :  { %v1031_v63 = vmul.f32 %v3144_v57, %v1024_v54  ;;  %v1030_v4 = vmul.f32 %v1024_v54, %v3802_v61  ;;  %v1028_v50 = vmul.f32 0.5, %v3148_v13 }
 0x703   :  { %v927_v56 = vmul.f32 %v3146_v62, %v920_v58  ;;  %v926_v1 = vmul.f32 %v920_v58, %v3807_v15 }
 0x704   :  { %1033 = vrot.lane.b32.xlu0 %v1031_v63, %s3377_s2  ;;  %v1029_v16 = vadd.f32 0.5, %v1028_v50 }
 0x705   :  { %929 = vrot.lane.b32.xlu1 %v927_v56, %s3377_s2 }
 0x776   :  { %v1034_v5 = vpop.permute.xlu0 %1033 }
 0x777   :  { %v3856_v7 = vadd.f32 %v1034_v5, %v1030_v4  ;;  %v930_v24 = vpop.permute.xlu1 %929 }
 0x778   :  { %v3861_v29 = vadd.f32 %v930_v24, %v926_v1 }
 0x779   :  { %3149 = vtanh.f32 %v3856_v7 }
 0x77a   :  { %3151 = vtanh.f32 %v922_v23 }
 0x77b   :  { %3153 = vtanh.f32 %v3861_v29 }
 0x783   :  { %v3150_v21 = vpop.eup %3149 }
 0x784   :  { %v1038_v22 = vmul.f32 %v3150_v21, %v1029_v16  ;;  %v3152_v61 = vpop.eup %3151 }
 0x785   :  { %v924_v31 = vmul.f32 0.5, %v3152_v61  ;;  %v3154_v32 = vpop.eup %3153 }
 0x786   :  { %1040 = vrot.lane.b32.xlu0 %v1038_v22, %s3377_s2 }
 0x787   :  { %v925_v36 = vadd.f32 0.5, %v924_v31 }
 0x789   :  { %v3864_v40 = vmul.f32 %v3154_v32, %v925_v36 }
 0x7f8   :  { %v1041_v33 = vpop.permute.xlu0 %1040 }
 0x7f9   :  { %v1043_v38 = vsel %vm351_vm2, %v1041_v33, %v3864_v40 }
 0x7fa   :  { %1109 = vmatmul.mubr.f32.vlgmr.msra.gmra.mrb[16].mxu0 %v1043_v38 }
 0x7fb   :  { %2820 = vmatpush1.bf16.msra.mxu0 %v3527_v9  ;;  %1210 = vmatprep.mubr.f32.mxu0 %v3376_v0 }
 0x7fc   :  { %2822 = vmatprep.subr.bf16.mxu0 %v3543_v14 }
 0x7ff   :  { %2824 = vmatpush1.bf16.msra.mxu0 %v3558_v18 }
 0x800   :  { %2826 = vmatprep.subr.bf16.mxu0 %v3561_v19 }
 0x803   :  { %2828 = vmatpush1.bf16.msra.mxu0 %v3581_v25 }
 0x804   :  { %2830 = vmatprep.subr.bf16.mxu0 %v3584_v26 }
 0x807   :  { %2832 = vmatpush1.bf16.msra.mxu0 %v3598_v30 }
 0x808   :  { %2866 = vmatprep.subr.bf16.mxu0 %v3525_v8 }
 0x80a   :  { %2472 = vmatmul.mubr.msk.f32.vlgmr.msra.gmra.mrb[8].mxu0 %vm351_vm2, %v1041_v33 }
 0x80b   :  { %2868 = vmatpush1.bf16.msra.mxu0 %v3527_v9  ;;  %1408 = vmatprep.mubr.f32.mxu0 %v3376_v0 }
 0x80c   :  { %2870 = vmatprep.subr.bf16.mxu0 %v3543_v14 }
 0x80f   :  { %2872 = vmatpush1.bf16.msra.mxu0 %v3558_v18 }
 0x810   :  { %2874 = vmatprep.subr.bf16.mxu0 %v3561_v19 }
 0x813   :  { %2876 = vmatpush1.bf16.msra.mxu0 %v3581_v25 }
 0x814   :  { %2878 = vmatprep.subr.bf16.mxu0 %v3584_v26 }
 0x817   :  { %2880 = vmatpush1.bf16.msra.mxu0 %v3598_v30 }
 0x818   :  { %2914 = vmatprep.subr.bf16.mxu0 %v3525_v8 }
 0x8cd   :  { %v1110_v15 = vpop.f32.mrb[16].mxu0 }
 0x8ce   :  { %v1111_v41 = vadd.f32 %v1110_v15, %v3744_v49  ;;  %v1112_v42 = vpop.f32.mrb[17].mxu0 }
 0x8cf   :  { %v1113_v48 = vadd.f32 %v1112_v42, %v3750_v12 }
 0x8d0   :  { %v1115_v44 = vmul.f32 0.5, %v1111_v41 }
 0x8d1   :  { %v1120_v38 = vmul.f32 0.5, %v1113_v48 }
 0x8d2   :  { %3155 = vtanh.f32 %v1115_v44 }
 0x8d3   :  { %3157 = vtanh.f32 %v1113_v48 }
 0x8dc   :  { %v3156_v52 = vpop.eup %3155 }
 0x8dd   :  { %v1117_v53 = vmul.f32 0.5, %v3156_v52  ;;  %v1212_v54 = vpop.f32.mrb[8].mxu0  ;;  %v3158_v63 = vpop.eup %3157 }
 0x8de   :  { %v3061_v57 = vadd.f32 %v1212_v54, %v3643_v39  ;;  %v1214_v58 = vpop.f32.mrb[9].mxu0 }
 0x8df   :  { %v1118_v62 = vadd.f32 0.5, %v1117_v53  ;;  %v3062_v4 = vadd.f32 %v1214_v58, %v3649_v43 }
 0x8e0   :  { %v1219_v56 = vmul.f32 0.5, %v3061_v57 }
 0x8e1   :  { %v1125_v46 = vmul.f32 %v3158_v63, %v1118_v62  ;;  %v1224_v22 = vmul.f32 0.5, %v3062_v4  ;;  %v1124_v41 = vmul.f32 %v1118_v62, %v3861_v29 }
 0x8e2   :  { %3159 = vtanh.f32 %v1219_v56 }
 0x8e3   :  { %3161 = vtanh.f32 %v3062_v4 }
 0x8e4   :  { %3163 = vtanh.f32 %v1224_v22 }
 0x8ec   :  { %v3160_v5 = vpop.eup %3159 }
 0x8ed   :  { %v1221_v13 = vmul.f32 0.5, %v3160_v5  ;;  %v3162_v16 = vpop.eup %3161 }
 0x8ee   :  { %v3164_v61 = vpop.eup %3163 }
 0x8ef   :  { %v1222_v50 = vadd.f32 0.5, %v1221_v13  ;;  %v1226_v31 = vmul.f32 0.5, %v3164_v61 }
 0x8f1   :  { %v1229_v21 = vmul.f32 %v3162_v16, %v1222_v50  ;;  %v1228_v23 = vmul.f32 %v1222_v50, %v3856_v7  ;;  %v1227_v32 = vadd.f32 0.5, %v1226_v31 }
 0x8f3   :  { %1231 = vrot.lane.b32.xlu1 %v1229_v21, %s3377_s2 }
 0x8f7   :  { %1127 = vrot.lane.b32.xlu1 %v1125_v46, %s3377_s2 }
 0x965   :  { %v1232_v24 = vpop.permute.xlu1 %1231 }
 0x966   :  { %v3894_v1 = vadd.f32 %v1232_v24, %v1228_v23 }
 0x968   :  { %3165 = vtanh.f32 %v3894_v1 }
 0x969   :  { %v1128_v15 = vpop.permute.xlu1 %1127  ;;  %3167 = vtanh.f32 %v1120_v38 }
 0x96a   :  { %v3899_v42 = vadd.f32 %v1128_v15, %v1124_v41 }
 0x96c   :  { %3169 = vtanh.f32 %v3899_v42 }
 0x972   :  { %v3166_v36 = vpop.eup %3165 }
 0x973   :  { %v1236_v33 = vmul.f32 %v3166_v36, %v1227_v32  ;;  %v3168_v7 = vpop.eup %3167 }
 0x974   :  { %v1122_v44 = vmul.f32 0.5, %v3168_v7 }
 0x975   :  { %1238 = vrot.lane.b32.xlu0 %v1236_v33, %s3377_s2 }
 0x976   :  { %v3170_v52 = vpop.eup %3169  ;;  %v1123_v53 = vadd.f32 0.5, %v1122_v44 }
 0x978   :  { %v3902_v54 = vmul.f32 %v3170_v52, %v1123_v53 }
 0x9e7   :  { %v1239_v57 = vpop.permute.xlu0 %1238 }
 0x9e8   :  { %v1241_v58 = vsel %vm351_vm2, %v1239_v57, %v3902_v54  ;;  %2473 = vmatmul.mubr.msk.f32.vlgmr.msra.gmra.mrb[10].mxu0 %vm351_vm2, %v1239_v57 }
 0x9e9   :  { %1307 = vmatmul.mubr.f32.vlgmr.msra.gmra.mrb[6].mxu1 %v1241_v58  ;;  %2916 = vmatpush1.bf16.msra.mxu0 %v3527_v9 }
 0x9ea   :  { %2884 = vmatpush1.bf16.msra.mxu1 %v3661_v59  ;;  %2918 = vmatprep.subr.bf16.mxu0 %v3543_v14 }
 0x9eb   :  { %2886 = vmatprep.subr.bf16.mxu1 %v3663_v60  ;;  %1606 = vmatprep.mubr.f32.mxu0 %v3376_v0 }
 0x9ec   :  { %1504 = vmatprep.mubr.f32.mxu1 %v3376_v0 }
 0x9ed   :  { %2920 = vmatpush1.bf16.msra.mxu0 %v3558_v18 }
 0x9ee   :  { %2888 = vmatpush1.bf16.msra.mxu1 %v3667_v2  ;;  %2922 = vmatprep.subr.bf16.mxu0 %v3561_v19 }
 0x9ef   :  { %2890 = vmatprep.subr.bf16.mxu1 %v3670_v3 }
 0x9f1   :  { %2924 = vmatpush1.bf16.msra.mxu0 %v3581_v25 }
 0x9f2   :  { %2892 = vmatpush1.bf16.msra.mxu1 %v3673_v10  ;;  %2926 = vmatprep.subr.bf16.mxu0 %v3584_v26 }
 0x9f3   :  { %2894 = vmatprep.subr.bf16.mxu1 %v3676_v11 }
 0x9f5   :  { %2928 = vmatpush1.bf16.msra.mxu0 %v3598_v30 }
 0x9f6   :  { %2896 = vmatpush1.bf16.msra.mxu1 %v3679_v17  ;;  %2962 = vmatprep.subr.bf16.mxu0 %v3525_v8 }
 0x9f7   :  { %2898 = vmatprep.subr.bf16.mxu1 %v3682_v20 }
 0x9fa   :  { %2900 = vmatpush1.bf16.msra.mxu1 %v3685_v27 }
 0x9fb   :  { %2902 = vmatprep.subr.bf16.mxu1 %v3688_v28 }
 0x9fe   :  { %2904 = vmatpush1.bf16.msra.mxu1 %v3691_v34 }
 0x9ff   :  { %2906 = vmatprep.subr.bf16.mxu1 %v3694_v35 }
 0xa02   :  { %2908 = vmatpush1.bf16.msra.mxu1 %v3697_v45 }
 0xa03   :  { %2910 = vmatprep.subr.bf16.mxu1 %v3700_v47 }
 0xa06   :  { %2912 = vmatpush1.bf16.msra.mxu1 %v3703_v51 }
 0xa07   :  { %2930 = vmatprep.subr.bf16.mxu1 %v3659_v55 }
 0xabb   :  { %v1410_v29 = vpop.f32.mrb[10].mxu0 }
 0xabc   :  { %v3063_v8 = vadd.f32 %v1410_v29, %v3643_v39  ;;  %v1308_v48 = vpop.f32.mrb[6].mxu1  ;;  %v1412_v62 = vpop.f32.mrb[11].mxu0 }
 0xabd   :  { %v1309_v63 = vadd.f32 %v1308_v48, %v3744_v49  ;;  %v1310_v56 = vpop.f32.mrb[7].mxu1  ;;  %v3064_v5 = vadd.f32 %v1412_v62, %v3649_v43 }
 0xabe   :  { %v1417_v46 = vmul.f32 0.5, %v3063_v8  ;;  %v1311_v13 = vadd.f32 %v1310_v56, %v3750_v12 }
 0xabf   :  { %v1313_v4 = vmul.f32 0.5, %v1309_v63  ;;  %v1422_v33 = vmul.f32 0.5, %v3064_v5 }
 0xac0   :  { %3171 = vtanh.f32 %v1417_v46  ;;  %v1318_v58 = vmul.f32 0.5, %v1311_v13 }
 0xac1   :  { %3173 = vtanh.f32 %v1313_v4 }
 0xac2   :  { %3175 = vtanh.f32 %v3064_v5 }
 0xac3   :  { %3177 = vtanh.f32 %v1311_v13 }
 0xac4   :  { %3179 = vtanh.f32 %v1422_v33 }
 0xaca   :  { %v3172_v50 = vpop.eup %3171 }
 0xacb   :  { %v3174_v16 = vpop.eup %3173  ;;  %v1419_v21 = vmul.f32 0.5, %v3172_v50 }
 0xacc   :  { %v1315_v22 = vmul.f32 0.5, %v3174_v16  ;;  %v3176_v24 = vpop.eup %3175 }
 0xacd   :  { %v1420_v23 = vadd.f32 0.5, %v1419_v21  ;;  %v3178_v31 = vpop.eup %3177 }
 0xace   :  { %v1316_v61 = vadd.f32 0.5, %v1315_v22  ;;  %v3180_v7 = vpop.eup %3179 }
 0xacf   :  { %v1427_v32 = vmul.f32 %v3176_v24, %v1420_v23  ;;  %v1426_v38 = vmul.f32 %v1420_v23, %v3894_v1  ;;  %v1424_v44 = vmul.f32 0.5, %v3180_v7 }
 0xad0   :  { %v1323_v36 = vmul.f32 %v3178_v31, %v1316_v61  ;;  %v1322_v8 = vmul.f32 %v1316_v61, %v3899_v42 }
 0xad1   :  { %1429 = vrot.lane.b32.xlu0 %v1427_v32, %s3377_s2  ;;  %v1425_v52 = vadd.f32 0.5, %v1424_v44 }
 0xad5   :  { %1325 = vrot.lane.b32.xlu0 %v1323_v36, %s3377_s2 }
 0xb43   :  { %v1430_v15 = vpop.permute.xlu0 %1429 }
 0xb44   :  { %v3940_v41 = vadd.f32 %v1430_v15, %v1426_v38 }
 0xb46   :  { %3181 = vtanh.f32 %v3940_v41 }
 0xb47   :  { %v1326_v29 = vpop.permute.xlu0 %1325  ;;  %3183 = vtanh.f32 %v1318_v58 }
 0xb48   :  { %v3945_v48 = vadd.f32 %v1326_v29, %v1322_v8 }
 0xb4a   :  { %3185 = vtanh.f32 %v3945_v48 }
 0xb50   :  { %v3182_v53 = vpop.eup %3181 }
 0xb51   :  { %v1434_v57 = vmul.f32 %v3182_v53, %v1425_v52  ;;  %v3184_v1 = vpop.eup %3183 }
 0xb52   :  { %v1320_v62 = vmul.f32 0.5, %v3184_v1 }
 0xb53   :  { %1436 = vrot.lane.b32.xlu1 %v1434_v57, %s3377_s2 }
 0xb54   :  { %v3186_v63 = vpop.eup %3185  ;;  %v1321_v56 = vadd.f32 0.5, %v1320_v62 }
 0xb56   :  { %v3948_v46 = vmul.f32 %v3186_v63, %v1321_v56 }
 0xbc5   :  { %v1437_v4 = vpop.permute.xlu1 %1436 }
 0xbc6   :  { %v1439_v5 = vsel %vm351_vm2, %v1437_v4, %v3948_v46  ;;  %2474 = vmatmul.mubr.msk.f32.vlgmr.msra.gmra.mrb[12].mxu0 %vm351_vm2, %v1437_v4 }
 0xbc7   :  { %1505 = vmatmul.mubr.f32.vlgmr.msra.gmra.mrb[8].mxu1 %v1439_v5  ;;  %2964 = vmatpush1.bf16.msra.mxu0 %v3527_v9 }
 0xbc8   :  { %2932 = vmatpush1.bf16.msra.mxu1 %v3661_v59  ;;  %2966 = vmatprep.subr.bf16.mxu0 %v3543_v14 }
 0xbc9   :  { %2934 = vmatprep.subr.bf16.mxu1 %v3663_v60  ;;  %1804 = vmatprep.mubr.f32.mxu0 %v3376_v0 }
 0xbca   :  { %1702 = vmatprep.mubr.f32.mxu1 %v3376_v0 }
 0xbcb   :  { %2968 = vmatpush1.bf16.msra.mxu0 %v3558_v18 }
 0xbcc   :  { %2936 = vmatpush1.bf16.msra.mxu1 %v3667_v2  ;;  %2970 = vmatprep.subr.bf16.mxu0 %v3561_v19 }
 0xbcd   :  { %2938 = vmatprep.subr.bf16.mxu1 %v3670_v3 }
 0xbcf   :  { %2972 = vmatpush1.bf16.msra.mxu0 %v3581_v25 }
 0xbd0   :  { %2940 = vmatpush1.bf16.msra.mxu1 %v3673_v10  ;;  %2974 = vmatprep.subr.bf16.mxu0 %v3584_v26 }
 0xbd1   :  { %2942 = vmatprep.subr.bf16.mxu1 %v3676_v11 }
 0xbd3   :  { %2976 = vmatpush1.bf16.msra.mxu0 %v3598_v30 }
 0xbd4   :  { %2944 = vmatpush1.bf16.msra.mxu1 %v3679_v17  ;;  %2978 = vmatprep.subr.bf16.mxu0 %v3659_v55 }
 0xbd5   :  { %2946 = vmatprep.subr.bf16.mxu1 %v3682_v20 }
 0xbd8   :  { %2948 = vmatpush1.bf16.msra.mxu1 %v3685_v27 }
 0xbd9   :  { %2950 = vmatprep.subr.bf16.mxu1 %v3688_v28 }
 0xbdc   :  { %2952 = vmatpush1.bf16.msra.mxu1 %v3691_v34 }
 0xbdd   :  { %2954 = vmatprep.subr.bf16.mxu1 %v3694_v35 }
 0xbe0   :  { %2956 = vmatpush1.bf16.msra.mxu1 %v3697_v45 }
 0xbe1   :  { %2958 = vmatprep.subr.bf16.mxu1 %v3700_v47 }
 0xbe4   :  { %2960 = vmatpush1.bf16.msra.mxu1 %v3703_v51 }
 0xc99   :  { %v1608_v9 = vpop.f32.mrb[12].mxu0 }
 0xc9a   :  { %v3065_v14 = vadd.f32 %v1608_v9, %v3643_v39  ;;  %v1506_v18 = vpop.f32.mrb[8].mxu1  ;;  %v1610_v19 = vpop.f32.mrb[13].mxu0 }
 0xc9b   :  { %v1507_v25 = vadd.f32 %v1506_v18, %v3744_v49  ;;  %v1508_v26 = vpop.f32.mrb[9].mxu1  ;;  %v3066_v42 = vadd.f32 %v1610_v19, %v3649_v43 }
 0xc9c   :  { %v1615_v30 = vmul.f32 0.5, %v3065_v14  ;;  %v1509_v13 = vadd.f32 %v1508_v26, %v3750_v12 }
 0xc9d   :  { %v1511_v55 = vmul.f32 0.5, %v1507_v25  ;;  %v1620_v33 = vmul.f32 0.5, %v3066_v42 }
 0xc9e   :  { %3187 = vtanh.f32 %v1615_v30  ;;  %v1516_v29 = vmul.f32 0.5, %v1509_v13 }
 0xc9f   :  { %3189 = vtanh.f32 %v1511_v55 }
 0xca0   :  { %3191 = vtanh.f32 %v3066_v42 }
 0xca1   :  { %3193 = vtanh.f32 %v1509_v13 }
 0xca2   :  { %3195 = vtanh.f32 %v1620_v33 }
 0xca8   :  { %v3188_v50 = vpop.eup %3187 }
 0xca9   :  { %v3190_v16 = vpop.eup %3189  ;;  %v1617_v21 = vmul.f32 0.5, %v3188_v50 }
 0xcaa   :  { %v1513_v22 = vmul.f32 0.5, %v3190_v16  ;;  %v3192_v24 = vpop.eup %3191 }
 0xcab   :  { %v1618_v23 = vadd.f32 0.5, %v1617_v21  ;;  %v3194_v31 = vpop.eup %3193 }
 0xcac   :  { %v1514_v61 = vadd.f32 0.5, %v1513_v22  ;;  %v3196_v44 = vpop.eup %3195 }
 0xcad   :  { %v1625_v32 = vmul.f32 %v3192_v24, %v1618_v23  ;;  %v1624_v38 = vmul.f32 %v1618_v23, %v3940_v41  ;;  %v1622_v52 = vmul.f32 0.5, %v3196_v44 }
 0xcae   :  { %v1521_v36 = vmul.f32 %v3194_v31, %v1514_v61  ;;  %v1520_v1 = vmul.f32 %v1514_v61, %v3945_v48 }
 0xcaf   :  { %1627 = vrot.lane.b32.xlu1 %v1625_v32, %s3377_s2  ;;  %v1623_v53 = vadd.f32 0.5, %v1622_v52  ;;  %v1939_v52 = vld [vmem:[#allocation10] sm:$0xff] }
 0xcb3   :  { %1523 = vrot.lane.b32.xlu1 %v1521_v36, %s3377_s2 }
 0xd21   :  { %v1628_v15 = vpop.permute.xlu1 %1627 }
 0xd22   :  { %v3985_v7 = vadd.f32 %v1628_v15, %v1624_v38 }
 0xd24   :  { %3197 = vtanh.f32 %v3985_v7 }
 0xd25   :  { %v1524_v8 = vpop.permute.xlu1 %1523  ;;  %3199 = vtanh.f32 %v1516_v29 }
 0xd26   :  { %v3990_v62 = vadd.f32 %v1524_v8, %v1520_v1 }
 0xd28   :  { %3201 = vtanh.f32 %v3990_v62 }
 0xd2e   :  { %v3198_v57 = vpop.eup %3197 }
 0xd2f   :  { %v1632_v58 = vmul.f32 %v3198_v57, %v1623_v53  ;;  %v3200_v41 = vpop.eup %3199  ;;  %v1940_v53 = vld [vmem:[#allocation10 + $0x8] sm:$0xff] }
 0xd30   :  { %v1518_v63 = vmul.f32 0.5, %v3200_v41  ;;  %v3009_v57 = vpack.c.bf16 %v1940_v53, %v1939_v52  ;;  %v1941_v41 = vld [vmem:[#allocation10 + $0x10] sm:$0xff] }
 0xd31   :  { %1634 = vrot.lane.b32.xlu0 %v1632_v58, %s3377_s2 }
 0xd32   :  { %v3202_v56 = vpop.eup %3201  ;;  %v1519_v4 = vadd.f32 0.5, %v1518_v63  ;;  %3010 = vmatprep.subr.bf16.mxu1 %v3009_v57  ;;  %v1942_v63 = vld [vmem:[#allocation10 + $0x18] sm:$0xff] }
 0xd34   :  { %v3993_v5 = vmul.f32 %v3202_v56, %v1519_v4  ;;  %v3013_v56 = vpack.c.bf16 %v1942_v63, %v1941_v41  ;;  %v1943_v4 = vld [vmem:[#allocation10 + $0x20] sm:$0xff] }
 0xda3   :  { %v1635_v9 = vpop.permute.xlu0 %1634 }
 0xda4   :  { %v1637_v14 = vsel %vm351_vm2, %v1635_v9, %v3993_v5  ;;  %2475 = vmatmul.mubr.msk.f32.vlgmr.msra.gmra.mrb[14].mxu0 %vm351_vm2, %v1635_v9  ;;  %v1944_v9 = vld [vmem:[#allocation10 + $0x28] sm:$0xff] }
 0xda5   :  { %1703 = vmatmul.mubr.f32.vlgmr.msra.gmra.mrb[10].mxu1 %v1637_v14  ;;  %2980 = vmatpush1.bf16.msra.mxu0 %v3661_v59  ;;  %v3017_v14 = vpack.c.bf16 %v1944_v9, %v1943_v4 }
 0xda6   :  { %2982 = vmatprep.subr.bf16.mxu0 %v3663_v60  ;;  %1900 = vmatprep.mubr.f32.mxu0 %v3376_v0 }
 0xda7   :  { %3012 = vmatpush3.bf16.msra.mxu1 %v3009_v57 }
 0xda8   :  { %3014 = vmatprep.subr.bf16.mxu1 %v3013_v56 }
 0xda9   :  { %2984 = vmatpush1.bf16.msra.mxu0 %v3667_v2 }
 0xdaa   :  { %2986 = vmatprep.subr.bf16.mxu0 %v3670_v3 }
 0xdab   :  { %3016 = vmatpush3.bf16.msra.mxu1 %v3013_v56 }
 0xdac   :  { %3018 = vmatprep.subr.bf16.mxu1 %v3017_v14 }
 0xdad   :  { %2988 = vmatpush1.bf16.msra.mxu0 %v3673_v10 }
 0xdae   :  { %2990 = vmatprep.subr.bf16.mxu0 %v3676_v11 }
 0xdaf   :  { %3020 = vmatpush3.bf16.msra.mxu1 %v3017_v14 }
 0xdb1   :  { %2992 = vmatpush1.bf16.msra.mxu0 %v3679_v17 }
 0xdb2   :  { %2994 = vmatprep.subr.bf16.mxu0 %v3682_v20 }
 0xdb5   :  { %2996 = vmatpush1.bf16.msra.mxu0 %v3685_v27 }
 0xdb6   :  { %2998 = vmatprep.subr.bf16.mxu0 %v3688_v28 }
 0xdb9   :  { %3000 = vmatpush1.bf16.msra.mxu0 %v3691_v34 }
 0xdba   :  { %3002 = vmatprep.subr.bf16.mxu0 %v3694_v35 }
 0xdbd   :  { %3004 = vmatpush1.bf16.msra.mxu0 %v3697_v45 }
 0xdbe   :  { %3006 = vmatprep.subr.bf16.mxu0 %v3700_v47 }
 0xdc1   :  { %3008 = vmatpush1.bf16.msra.mxu0 %v3703_v51 }
 0xe77   :  { %v1806_v0 = vpop.f32.mrb[14].mxu0 }
 0xe78   :  { %v3067_v59 = vadd.f32 %v1806_v0, %v3643_v39  ;;  %v1704_v60 = vpop.f32.mrb[10].mxu1  ;;  %v1808_v2 = vpop.f32.mrb[15].mxu0 }
 0xe79   :  { %v1705_v3 = vadd.f32 %v1704_v60, %v3744_v49  ;;  %v1706_v10 = vpop.f32.mrb[11].mxu1  ;;  %v3068_v20 = vadd.f32 %v1808_v2, %v3649_v43  ;;  %v1945_v60 = vld [vmem:[#allocation10 + $0x30] sm:$0xff] }
 0xe7a   :  { %v1813_v11 = vmul.f32 0.5, %v3067_v59  ;;  %v1707_v27 = vadd.f32 %v1706_v10, %v3750_v12 }
 0xe7b   :  { %v1709_v17 = vmul.f32 0.5, %v1705_v3  ;;  %v1818_v43 = vmul.f32 0.5, %v3068_v20 }
 0xe7c   :  { %3203 = vtanh.f32 %v1813_v11  ;;  %v1714_v42 = vmul.f32 0.5, %v1707_v27 }
 0xe7d   :  { %3205 = vtanh.f32 %v1709_v17 }
 0xe7e   :  { %3207 = vtanh.f32 %v3068_v20 }
 0xe7f   :  { %3209 = vtanh.f32 %v1707_v27 }
 0xe80   :  { %3211 = vtanh.f32 %v1818_v43 }
 0xe86   :  { %v3204_v28 = vpop.eup %3203 }
 0xe87   :  { %v3206_v34 = vpop.eup %3205  ;;  %v1815_v35 = vmul.f32 0.5, %v3204_v28 }
 0xe88   :  { %v1711_v45 = vmul.f32 0.5, %v3206_v34  ;;  %v3208_v47 = vpop.eup %3207 }
 0xe89   :  { %v1816_v39 = vadd.f32 0.5, %v1815_v35  ;;  %v3210_v48 = vpop.eup %3209 }
 0xe8a   :  { %v1712_v51 = vadd.f32 0.5, %v1711_v45  ;;  %v3212_v55 = vpop.eup %3211 }
 0xe8b   :  { %v1823_v18 = vmul.f32 %v3208_v47, %v1816_v39  ;;  %v1822_v25 = vmul.f32 %v1816_v39, %v3985_v7  ;;  %v1820_v13 = vmul.f32 0.5, %v3212_v55 }
 0xe8c   :  { %v1719_v19 = vmul.f32 %v3210_v48, %v1712_v51  ;;  %v1718_v16 = vmul.f32 %v1712_v51, %v3990_v62 }
 0xe8d   :  { %1825 = vrot.lane.b32.xlu0 %v1823_v18, %s3377_s2  ;;  %v1821_v21 = vadd.f32 0.5, %v1820_v13  ;;  %v2110_v18 = vld [vmem:[%s4145_s8 + $0x18] sm:$0xff] }
 0xe8e   :  { %1721 = vrot.lane.b32.xlu1 %v1719_v19, %s3377_s2 }
 0xeff   :  { %v1826_v26 = vpop.permute.xlu0 %1825 }
 0xf00   :  { %v1828_v30 = vadd.f32 %v1826_v26, %v1822_v25  ;;  %v1722_v50 = vpop.permute.xlu1 %1721 }
 0xf01   :  { %v4022_v23 = vadd.f32 %v1722_v50, %v1718_v16  ;;  %v2111_v50 = vld [vmem:[%s4145_s8 + $0x20] sm:$0xff]  ;;  %v2112_v16 = vld [vmem:[%s4145_s8 + $0x28] sm:$0xff] }
 0xf02   :  { %3213 = vtanh.f32 %v1828_v30 }
 0xf03   :  { %3215 = vtanh.f32 %v1714_v42 }
 0xf04   :  { %3217 = vtanh.f32 %v4022_v23 }
 0xf0c   :  { %v3214_v22 = vpop.eup %3213 }
 0xf0d   :  { %v1830_v24 = vmul.f32 %v3214_v22, %v1821_v21  ;;  %v3216_v61 = vpop.eup %3215  ;;  %v3033_v21 = vpack.c.bf16 %v2112_v16, %v2111_v50  ;;  %v2113_v22 = vld [vmem:[%s4145_s8 + $0x30] sm:$0xff] }
 0xf0e   :  { %v1716_v31 = vmul.f32 0.5, %v3216_v61  ;;  %v3218_v32 = vpop.eup %3217 }
 0xf0f   :  { %1832 = vrot.lane.b32.xlu0 %v1830_v24, %s3377_s2 }
 0xf10   :  { %v1717_v36 = vadd.f32 0.5, %v1716_v31 }
 0xf12   :  { %v1726_v33 = vmul.f32 %v3218_v32, %v1717_v36  ;;  %v2476_v32 = vld [vmem:[#allocation12] ss:$0 sm:$0xff] }
 0xf13   :  { %541 = vrot.lane.b32.xlu0 %v3764_v6, %s3377_s2 }
 0xf17   :  { %936 = vrot.lane.b32.xlu0 %v3864_v40, %s3377_s2 }
 0xf1b   :  { %1332 = vrot.lane.b32.xlu0 %v3948_v46, %s3377_s2 }
 0xf1f   :  { %1728 = vrot.lane.b32.xlu0 %v1726_v33, %s3377_s2 }
 0xf81   :  { %v1833_v38 = vpop.permute.xlu0 %1832 }
 0xf82   :  { %v1835_v15 = vsel %vm351_vm2, %v1833_v38, %v1726_v33 }
 0xf83   :  { %1901 = vmatmul.mubr.f32.vlgmr.msra.gmra.mrb[18].mxu0 %v1835_v15 }
 0xf85   :  { %v542_v7 = vpop.permute.xlu0 %541 }
 0xf86   :  { %544 = vst.msk [vmem:[#allocation3] sm:$0xff] %vm351_vm2, %v542_v7 }
 0xf89   :  { %v937_v6 = vpop.permute.xlu0 %936 }
 0xf8a   :  { %940 = vst.msk [vmem:[#allocation3 + $0x10] sm:$0xff] %vm351_vm2, %v937_v6 }
 0xf8d   :  { %v1333_v44 = vpop.permute.xlu0 %1332  ;;  %v1931_v40 = vld [vmem:[#allocation3] sm:$0xff] }
 0xf8e   :  { %1336 = vst.msk [vmem:[#allocation3 + $0x20] sm:$0xff] %vm351_vm2, %v1333_v44  ;;  %2565 = vmatprep.mubr.msk.f32.mxu1 %vm351_vm2, %v1931_v40 }
 0xf91   :  { %v1729_v46 = vpop.permute.xlu0 %1728  ;;  %v1933_v43 = vld [vmem:[#allocation3 + $0x10] sm:$0xff] }
 0xf92   :  { %1732 = vst.msk [vmem:[#allocation3 + $0x30] sm:$0xff] %vm351_vm2, %v1729_v46 }
 0xf95   :  { %v1935_v55 = vld [vmem:[#allocation3 + $0x20] sm:$0xff] }
 0xf99   :  { %v1937_v13 = vld [vmem:[#allocation3 + $0x30] sm:$0xff] }
0x1056   :  { %v1902_v58 = vpop.f32.mrb[18].mxu0 }
0x1057   :  { %v1903_v29 = vadd.f32 %v1902_v58, %v3744_v49  ;;  %v1904_v8 = vpop.f32.mrb[19].mxu0  ;;  %v1946_v49 = vld [vmem:[#allocation10 + $0x38] sm:$0xff] }
0x1058   :  { %v1905_v62 = vadd.f32 %v1904_v8, %v3750_v12  ;;  %v3021_v3 = vpack.c.bf16 %v1946_v49, %v1945_v60  ;;  %v2280_v60 = vld [vmem:[%s4147_s10 + $0x8] sm:$0xff] }
0x1059   :  { %v1907_v1 = vmul.f32 0.5, %v1903_v29 }
0x105a   :  { %3022 = vmatprep.subr.bf16.mxu1 %v3021_v3  ;;  %v1912_v12 = vmul.f32 0.5, %v1905_v62 }
0x105b   :  { %3219 = vtanh.f32 %v1907_v1  ;;  %3024 = vmatpush3.bf16.msra.mxu1 %v3021_v3  ;;  %v2282_v3 = vld [vmem:[%s4147_s10 + $0x18] sm:$0x3f] }
0x105c   :  { %3221 = vtanh.f32 %v1905_v62 }
0x105d   :  { %3223 = vtanh.f32 %v1912_v12 }
0x1065   :  { %v3220_v0 = vpop.eup %3219 }
0x1066   :  { %v1909_v59 = vmul.f32 0.5, %v3220_v0  ;;  %v3222_v10 = vpop.eup %3221 }
0x1067   :  { %v3224_v34 = vpop.eup %3223 }
0x1068   :  { %v1910_v2 = vadd.f32 0.5, %v1909_v59  ;;  %v1914_v35 = vmul.f32 0.5, %v3224_v34  ;;  %v2279_v59 = vld [vmem:[%s4147_s10] sm:$0xff] }
0x1069   :  { %v3043_v49 = vpack.c.bf16 %v2280_v60, %v2279_v59 }
0x106a   :  { %v1917_v11 = vmul.f32 %v3222_v10, %v1910_v2  ;;  %v1916_v17 = vmul.f32 %v1910_v2, %v4022_v23  ;;  %v1915_v51 = vadd.f32 0.5, %v1914_v35  ;;  %v2114_v23 = vld [vmem:[%s4145_s8 + $0x38] sm:$0xf]  ;;  %v2281_v2 = vld [vmem:[%s4147_s10 + $0x10] sm:$0xff] }
0x106b   :  { %v3037_v24 = vpack.c.bf16 %v2114_v23, %v2113_v22  ;;  %3044 = vmatprep.subr.bf16.mxu0 %v3043_v49  ;;  %v3047_v10 = vpack.c.bf16 %v2282_v3, %v2281_v2 }
0x106c   :  { %1919 = vrot.lane.b32.xlu1 %v1917_v11, %s3377_s2  ;;  %3046 = vmatpush3.bf16.msra.mxu0 %v3043_v49 }
0x106d   :  { %3049 = vmatprep.subr.msk.bf16.mxu0 %vm3048_vm13, %v3047_v10 }
0x1070   :  { %738 = vrot.lane.b32.xlu1 %v3810_v37, %s3377_s2  ;;  %v2107_v37 = vld [vmem:[%s4145_s8] sm:$0xff]  ;;  %3052 = vmatpush3.bf16.msk.msra.mxu0 %vm3048_vm13, %v3047_v10 }
0x1074   :  { %1134 = vrot.lane.b32.xlu1 %v3902_v54, %s3377_s2  ;;  %v2108_v54 = vld [vmem:[%s4145_s8 + $0x8] sm:$0xff] }
0x1075   :  { %v3025_v48 = vpack.c.bf16 %v2108_v54, %v2107_v37 }
0x1077   :  { %3026 = vmatprep.subr.bf16.mxu1 %v3025_v48 }
0x1078   :  { %1530 = vrot.lane.b32.xlu1 %v3993_v5, %s3377_s2  ;;  %v2109_v5 = vld [vmem:[%s4145_s8 + $0x10] sm:$0xff] }
0x1079   :  { %v3029_v25 = vpack.c.bf16 %v2110_v18, %v2109_v5 }
0x10de   :  { %v1920_v20 = vpop.permute.xlu1 %1919 }
0x10df   :  { %v1922_v27 = vadd.f32 %v1920_v20, %v1916_v17 }
0x10e1   :  { %3225 = vtanh.f32 %v1922_v27 }
0x10e2   :  { %v739_v28 = vpop.permute.xlu1 %738 }
0x10e3   :  { %742 = vst.msk [vmem:[#allocation3 + $0x8] sm:$0xff] %vm351_vm2, %v739_v28 }
0x10e6   :  { %v1135_v45 = vpop.permute.xlu1 %1134 }
0x10e7   :  { %1138 = vst.msk [vmem:[#allocation3 + $0x18] sm:$0xff] %vm351_vm2, %v1135_v45  ;;  %v2485_v45 = vld [vmem:[%s4146_s9] ss:$0 sm:$0xff] }
0x10ea   :  { %v1531_v39 = vpop.permute.xlu1 %1530  ;;  %v1932_v47 = vld [vmem:[#allocation3 + $0x8] sm:$0xff] }
0x10eb   :  { %v3226_v19 = vpop.eup %3225  ;;  %1534 = vst.msk [vmem:[#allocation3 + $0x28] sm:$0xff] %vm351_vm2, %v1531_v39  ;;  %2566 = vmatmul.mubr.msk.f32.vlgmr.msra.gmra.mrb[12].mxu1 %vm351_vm2, %v1932_v47 }
0x10ec   :  { %2568 = vmatprep.mubr.msk.f32.mxu1 %vm351_vm2, %v1933_v43  ;;  %v1924_v26 = vmul.f32 %v3226_v19, %v1915_v51  ;;  %3028 = vmatpush3.bf16.msra.mxu1 %v3025_v48 }
0x10ed   :  { %3030 = vmatprep.subr.bf16.mxu1 %v3029_v25 }
0x10ee   :  { %1926 = vrot.lane.b32.xlu1 %v1924_v26, %s3377_s2  ;;  %v1934_v30 = vld [vmem:[#allocation3 + $0x18] sm:$0xff] }
0x10ef   :  { %2569 = vmatmul.mubr.msk.f32.gmra.mrb[14].mxu1 %vm351_vm2, %v1934_v30 }
0x10f0   :  { %2571 = vmatprep.mubr.msk.f32.mxu1 %vm351_vm2, %v1935_v55  ;;  %3032 = vmatpush3.bf16.msra.mxu1 %v3029_v25 }
0x10f1   :  { %3034 = vmatprep.subr.bf16.mxu1 %v3033_v21 }
0x10f2   :  { %v1936_v42 = vld [vmem:[#allocation3 + $0x28] sm:$0xff] }
0x10f3   :  { %2572 = vmatmul.mubr.msk.f32.gmra.mrb[16].mxu1 %vm351_vm2, %v1936_v42 }
0x10f4   :  { %2574 = vmatprep.mubr.msk.f32.mxu1 %vm351_vm2, %v1937_v13  ;;  %3036 = vmatpush3.bf16.msra.mxu1 %v3033_v21 }
0x10f5   :  { %3039 = vmatprep.subr.msk.bf16.mxu1 %vm3038_vm4, %v3037_v24 }
0x10f8   :  { %3042 = vmatpush3.bf16.msk.msra.mxu1 %vm3038_vm4, %v3037_v24 }
0x1160   :  { %v1927_v61 = vpop.permute.xlu1 %1926 }
0x1161   :  { %1930 = vst.msk [vmem:[#allocation3 + $0x38] sm:$0xff] %vm351_vm2, %v1927_v61 }
0x1168   :  { %v1938_v31 = vld [vmem:[#allocation3 + $0x38] sm:$0xff] }
0x1169   :  { %2575 = vmatmul.mubr.msk.f32.gmra.mrb[18].mxu1 %vm351_vm2, %v1938_v31  ;;  %vm2290_vm2 = vcmask 244736  }
0x11be   :  { %v2567_v36 = vpop.f32.mrb[12].mxu1 }
0x11bf   :  { %v2050_v33 = vadd.f32 %v2567_v36, %v2476_v32  ;;  %v2044_v38 = vpop.f32.mrb[13].mxu1 }
0x11c0   :  { %v2045_v15 = vadd.f32 %v2476_v32, %v2044_v38 }
0x11c1   :  { %v2092_v7 = vmul.f32 0.01, %v2050_v33  ;;  %vm2084_vm5 = vcmp.gt.f32.partialorder %v2050_v33, 0.0 }
0x11c2   :  { %vm2083_vm6 = vcmp.gt.f32.partialorder %v2045_v15, 0.0  ;;  %v2091_v6 = vmul.f32 0.01, %v2045_v15  ;;  %v2570_v44 = vpop.f32.mrb[14].mxu1 }
0x11c3   :  { %v2060_v40 = vadd.f32 %v2570_v44, %v2476_v32  ;;  %v2054_v46 = vpop.f32.mrb[15].mxu1  ;;  %v2100_v57 = vsel %vm2084_vm5, %v2050_v33, %v2092_v7 }
0x11c4   :  { %v2055_v52 = vadd.f32 %v2476_v32, %v2054_v46  ;;  %v2099_v53 = vsel %vm2083_vm6, %v2045_v15, %v2091_v6 }
0x11c5   :  { %v2094_v58 = vmul.f32 0.01, %v2060_v40  ;;  %2593 = vmatprep.mubr.msk.f32.mxu1 %vm2122_vm7, %v2099_v53  ;;  %vm2086_vm8 = vcmp.gt.f32.partialorder %v2060_v40, 0.0 }
0x11c6   :  { %vm2085_vm9 = vcmp.gt.f32.partialorder %v2055_v52, 0.0  ;;  %v2093_v29 = vmul.f32 0.01, %v2055_v52  ;;  %v2573_v8 = vpop.f32.mrb[16].mxu1  ;;  %2594 = vmatmul.mubr.msk.f32.vlgmr.msra.gmra.mrb[20].mxu1 %vm2122_vm7, %v2100_v57 }
0x11c7   :  { %v2070_v1 = vadd.f32 %v2573_v8, %v2476_v32  ;;  %v2064_v62 = vpop.f32.mrb[17].mxu1  ;;  %v2102_v4 = vsel %vm2086_vm8, %v2060_v40, %v2094_v58  ;;  %v2495_v40 = vld [vmem:[%s4148_s11] ss:$0 sm:$0xff]  ;;  %s2437_s11 = sshll.u32 %s3379_s13, 4  ;;  %s2438_s11 = int_to_ptr.vmem [resolvable:$true] %s2437_s11 }
0x11c8   :  { %v2065_v41 = vadd.f32 %v2476_v32, %v2064_v62  ;;  %v2101_v63 = vsel %vm2085_vm9, %v2055_v52, %v2093_v29  ;;  %s3337_s19 = scalar_lea.vmem %s2438_s11, 1024  ;;  %p3342_p13 = scmp.lt.s32.totalorder %s2438_s11, %s2438_s11 }
0x11c9   :  { %v2096_v56 = vmul.f32 0.01, %v2070_v1  ;;  %2596 = vmatprep.mubr.msk.f32.mxu1 %vm2122_vm7, %v2101_v63  ;;  %vm2088_vm10 = vcmp.gt.f32.partialorder %v2070_v1, 0.0  ;;  %p3338_p12 = scmp.ne.s32.totalorder %s2438_s11, %s3337_s19  ;;  %p3343_p0 = scmp.lt.s32.totalorder %s3337_s19, %s3337_s19 }
0x11ca   :  { %vm2087_vm11 = vcmp.gt.f32.partialorder %v2065_v41, 0.0  ;;  %v2095_v9 = vmul.f32 0.01, %v2065_v41  ;;  %2597 = vmatmul.mubr.msk.f32.gmra.mrb[22].mxu1 %vm2122_vm7, %v2102_v4 }
0x11cb   :  { %v2104_v0 = vsel %vm2088_vm10, %v2070_v1, %v2096_v56  ;;  %p3344_p1 = por %p3343_p0, %p3342_p13 }
0x11cc   :  { %v2103_v14 = vsel %vm2087_vm11, %v2065_v41, %v2095_v9 }
0x11cd   :  { %2599 = vmatprep.mubr.msk.f32.mxu1 %vm2122_vm7, %v2103_v14  ;;  %p3345_p2 = pnand %p3344_p1, %p3338_p12 }
0x11ce   :  { %2600 = vmatmul.mubr.msk.f32.gmra.mrb[24].mxu1 %vm2122_vm7, %v2104_v0 }
0x123c   :  { %v2576_v11 = vpop.f32.mrb[18].mxu1 }
0x123d   :  { %v2080_v12 = vadd.f32 %v2576_v11, %v2476_v32  ;;  %v2074_v17 = vpop.f32.mrb[19].mxu1 }
0x123e   :  { %v2075_v20 = vadd.f32 %v2476_v32, %v2074_v17 }
0x123f   :  { %v2098_v27 = vmul.f32 0.01, %v2080_v12  ;;  %vm2090_vm14 = vcmp.gt.f32.partialorder %v2080_v12, 0.0 }
0x1240   :  { %vm2089_vm15 = vcmp.gt.f32.partialorder %v2075_v20, 0.0  ;;  %v2097_v28 = vmul.f32 0.01, %v2075_v20 }
0x1241   :  { %v2106_v35 = vsel %vm2090_vm14, %v2080_v12, %v2098_v27 }
0x1242   :  { %v2105_v34 = vsel %vm2089_vm15, %v2075_v20, %v2097_v28 }
0x1243   :  { %2602 = vmatprep.mubr.msk.f32.mxu1 %vm2122_vm7, %v2105_v34 }
0x1244   :  { %2603 = vmatmul.mubr.msk.f32.gmra.mrb[26].mxu1 %vm2122_vm7, %v2106_v35 }
0x1299   :  { %v2595_v37 = vpop.f32.mrb[20].mxu1 }
0x129a   :  { %v2222_v54 = vadd.f32 %v2595_v37, %v2485_v45  ;;  %v2216_v5 = vpop.f32.mrb[21].mxu1 }
0x129b   :  { %v2217_v39 = vadd.f32 %v2485_v45, %v2216_v5 }
0x129c   :  { %v2264_v47 = vmul.f32 0.01, %v2222_v54  ;;  %vm2256_vm0 = vcmp.gt.f32.partialorder %v2222_v54, 0.0 }
0x129d   :  { %vm2255_vm1 = vcmp.gt.f32.partialorder %v2217_v39, 0.0  ;;  %v2263_v51 = vmul.f32 0.01, %v2217_v39  ;;  %v2598_v48 = vpop.f32.mrb[22].mxu1 }
0x129e   :  { %v2232_v18 = vadd.f32 %v2598_v48, %v2485_v45  ;;  %v2226_v19 = vpop.f32.mrb[23].mxu1  ;;  %v2272_v26 = vsel %vm2256_vm0, %v2222_v54, %v2264_v47 }
0x129f   :  { %v2227_v43 = vadd.f32 %v2485_v45, %v2226_v19  ;;  %v2271_v25 = vsel %vm2255_vm1, %v2217_v39, %v2263_v51 }
0x12a0   :  { %v2266_v30 = vmul.f32 0.01, %v2232_v18  ;;  %2613 = vmatprep.mubr.msk.f32.mxu0 %vm2290_vm2, %v2271_v25  ;;  %vm2258_vm3 = vcmp.gt.f32.partialorder %v2232_v18, 0.0 }
0x12a1   :  { %vm2257_vm4 = vcmp.gt.f32.partialorder %v2227_v43, 0.0  ;;  %v2265_v55 = vmul.f32 0.01, %v2227_v43  ;;  %v2601_v42 = vpop.f32.mrb[24].mxu1  ;;  %2614 = vmatmul.mubr.msk.f32.vlgmr.msra.gmra.mrb[20].mxu0 %vm2290_vm2, %v2272_v26 }
0x12a2   :  { %v2242_v13 = vadd.f32 %v2601_v42, %v2485_v45  ;;  %v2236_v50 = vpop.f32.mrb[25].mxu1  ;;  %v2274_v23 = vsel %vm2258_vm3, %v2232_v18, %v2266_v30 }
0x12a3   :  { %v2237_v16 = vadd.f32 %v2485_v45, %v2236_v50  ;;  %v2273_v21 = vsel %vm2257_vm4, %v2227_v43, %v2265_v55 }
0x12a4   :  { %v2268_v22 = vmul.f32 0.01, %v2242_v13  ;;  %2616 = vmatprep.mubr.msk.f32.mxu0 %vm2290_vm2, %v2273_v21  ;;  %vm2260_vm5 = vcmp.gt.f32.partialorder %v2242_v13, 0.0 }
0x12a5   :  { %vm2259_vm6 = vcmp.gt.f32.partialorder %v2237_v16, 0.0  ;;  %v2267_v24 = vmul.f32 0.01, %v2237_v16  ;;  %2617 = vmatmul.mubr.msk.f32.gmra.mrb[22].mxu0 %vm2290_vm2, %v2274_v23 }
0x12a6   :  { %v2276_v31 = vsel %vm2260_vm5, %v2242_v13, %v2268_v22 }
0x12a7   :  { %v2275_v61 = vsel %vm2259_vm6, %v2237_v16, %v2267_v24 }
0x12a8   :  { %2619 = vmatprep.mubr.msk.f32.mxu0 %vm2290_vm2, %v2275_v61 }
0x12a9   :  { %2620 = vmatmul.mubr.msk.f32.gmra.mrb[24].mxu0 %vm2290_vm2, %v2276_v31 }
0x1317   :  { %v2604_v32 = vpop.f32.mrb[26].mxu1 }
0x1318   :  { %v2252_v36 = vadd.f32 %v2604_v32, %v2485_v45  ;;  %v2246_v33 = vpop.f32.mrb[27].mxu1 }
0x1319   :  { %v2247_v38 = vadd.f32 %v2485_v45, %v2246_v33 }
0x131a   :  { %v2270_v15 = vmul.f32 0.01, %v2252_v36  ;;  %vm2262_vm7 = vcmp.gt.f32.partialorder %v2252_v36, 0.0 }
0x131b   :  { %vm2261_vm8 = vcmp.gt.f32.partialorder %v2247_v38, 0.0  ;;  %v2269_v7 = vmul.f32 0.01, %v2247_v38 }
0x131c   :  { %v2278_v44 = vsel %vm2262_vm7, %v2252_v36, %v2270_v15 }
0x131d   :  { %v2277_v6 = vsel %vm2261_vm8, %v2247_v38, %v2269_v7 }
0x131e   :  { %2622 = vmatprep.mubr.msk.f32.mxu0 %vm2290_vm2, %v2277_v6 }
0x131f   :  { %2623 = vmatmul.mubr.msk.f32.gmra.mrb[26].mxu0 %vm2290_vm2, %v2278_v44 }
0x1374   :  { %v2615_v46 = vpop.f32.mrb[20].mxu0 }
0x1375   :  { %v2391_v52 = vadd.f32 %v2615_v46, %v2495_v40  ;;  %v2385_v53 = vpop.f32.mrb[21].mxu0 }
0x1376   :  { %v2386_v57 = vadd.f32 %v2495_v40, %v2385_v53 }
0x1377   :  { %2425 = vst [vmem:[#allocation13 + $0x8] sm:$0xff] %v2391_v52 }
0x1378   :  { %2424 = vst [vmem:[#allocation13] sm:$0xff] %v2386_v57  ;;  %v2618_v58 = vpop.f32.mrb[22].mxu0 }
0x1379   :  { %v2401_v29 = vadd.f32 %v2618_v58, %v2495_v40  ;;  %v2395_v8 = vpop.f32.mrb[23].mxu0 }
0x137a   :  { %v2396_v1 = vadd.f32 %v2495_v40, %v2395_v8 }
0x137b   :  { %2427 = vst [vmem:[#allocation13 + $0x18] sm:$0xff] %v2401_v29 }
0x137c   :  { %2426 = vst [vmem:[#allocation13 + $0x10] sm:$0xff] %v2396_v1  ;;  %v2621_v62 = vpop.f32.mrb[24].mxu0 }
0x137d   :  { %v2411_v41 = vadd.f32 %v2621_v62, %v2495_v40  ;;  %v2405_v63 = vpop.f32.mrb[25].mxu0 }
0x137e   :  { %v2406_v56 = vadd.f32 %v2495_v40, %v2405_v63 }
0x137f   :  { %2429 = vst [vmem:[#allocation13 + $0x28] sm:$0xff] %v2411_v41 }
0x1380   :  { %2428 = vst [vmem:[#allocation13 + $0x20] sm:$0xff] %v2406_v56 }
0x13f2   :  { %v2624_v4 = vpop.f32.mrb[26].mxu0 }
0x13f3   :  { %v2421_v9 = vadd.f32 %v2624_v4, %v2495_v40  ;;  %v2415_v14 = vpop.f32.mrb[27].mxu0 }
0x13f4   :  { %v2416_v0 = vadd.f32 %v2495_v40, %v2415_v14 }
0x13f5   :  { %2431 = vst [vmem:[#allocation13 + $0x38] sm:$0xff] %v2421_v9 }
0x13f6   :  { %2430 = vst [vmem:[#allocation13 + $0x30] sm:$0xff] %v2416_v0 }
0x13f7   :  { %3348 = shalt.err (!%p3345_p2)
}
0x13f8   :  { %s3349_s23 = scalar_lea.hbm %s4149_s12, 1024 }
0x13f9   :  { %p3350_p3 = scmp.ne.s32.totalorder %s4149_s12, %s3349_s23  ;;  %p3353_p4 = scmp.lt.u32.totalorder %s3349_s23, %s4149_s12 }
0x13fb   :  { %p3355_p5 = pnand %p3353_p4, %p3350_p3 }
0x13fd   :  { %3358 = shalt.err (!%p3355_p5)
}
0x13fe   :  { %2443 = dma.vmem_to_hbm [thread:$0]  %s2438_s11, 1024, %s4149_s12, [#allocation6], %s3371_s4, %s3371_s4, %s3372_s22  }
0x13ff   :  { %3365 = dma.done.wait [#allocation6], 1024  }
0x1400   :  { %3366 = vsyncadd [#allocation6], 4294966272 }
0x1401   :  { %2447 = vsyncpa [#allocation5], 1 }
0x1402   :  { %2448 = vsyncpa [#allocation8], 1 }
0x1403   :  { %2449 = vsyncpa [#allocation11], 1 }
0x1404   :  { %2450 = vsyncpa [#allocation6], 1 }

</bundles_post_ra>
